<compile_context>
chip_gen: v6e
topology: v6e:2x2x1
jax: 0.10.0
libtpu: 0.0.40
codegen_flags: <defaults>
</compile_context>

<pallas_src>
import numpy as np

import jax
import jax.numpy as jnp
from jax import lax
from jax.experimental import pallas as pl
from jax.experimental.pallas import tpu as pltpu

# ----------------------------- problem sizes --------------------------------
B = 2            # batch
N_IN = 4         # n_inputs
N_OUT = 6        # n_outputs
DIM = 16         # vector length (LayerNorm dim); divisible by num_heads
N_DIFF = 10      # number_of_diffusions
K_SIZE = 5       # Block conv kernel size
N_SC = (N_IN + N_OUT) // 2 + 1     # shortcut channels = 6
HID = 16         # SelfAttention hidden_dim (= attention sequence length)
N_HEADS = 4
HEAD_DIM = DIM // N_HEADS
DIM_EMBED = 64
DIM_LATENT = 128
LN_EPS = 1e-5
SLAB_W = 128     # lane width of the packed parameter slab


# ----------------------------- kernel helpers -------------------------------
def _mish(x):
    # mish(x) = x * tanh(softplus(x)) = x * u(u+2)/(u(u+2)+2), u = exp(x).
    # One exp + one approx-reciprocal (EUP) instead of exp+log+tanh.
    u = jnp.exp(jnp.minimum(x, 20.0))
    t = u * (u + 2.0)
    return x * (t * pl.reciprocal(t + 2.0, approx=True))


def _layernorm(x, w, b):
    # x: (R, DIM); w, b: (1, DIM)
    mu = jnp.mean(x, axis=-1, keepdims=True)
    var = jnp.mean(jnp.square(x - mu), axis=-1, keepdims=True)
    return (x - mu) * jax.lax.rsqrt(var + LN_EPS) * w + b


def _tap_stack(x2d, ksize, masks):
    # Stacked operand for a fused K-tap 'same' conv: rows [k*R:(k+1)*R] hold x
    # shifted by (k - pad) along lanes, zero-masked at the wrap-around.
    # masks: (K, DIM) constant loaded from the parameter slab.
    pad = (ksize - 1) // 2
    length = x2d.shape[1]
    pieces = []
    for k in range(ksize):
        d = k - pad
        if d == 0:
            pieces.append(x2d)
        else:
            rolled = pltpu.roll(x2d, shift=(-d) % length, axis=1)
            pieces.append(rolled * masks[k:k + 1, :])
    return jnp.concatenate(pieces, axis=0)


# ------------------------------- the kernel ---------------------------------
def _make_kernel(layout):
    def kernel(x_ref, emb_ref, slab_ref, out_ref):
        def g(name):
            r0, c0, nr, nc = layout[name]
            return slab_ref[r0:r0 + nr, c0:c0 + nc]

        def mm(a, bmat):
            return jnp.dot(a, bmat, preferred_element_type=jnp.float32)

        x2 = x_ref[...]                                     # (B*N_IN, DIM)
        emb = emb_ref[...]                                  # (B, DIM_EMBED)

        # ---------------- TimeEmbedding ----------------
        h1 = _mish(mm(emb, g('fc1_wt')) + g('fc1_b'))       # (B, DIM_LATENT)
        out0 = mm(h1, g('fc2_wt')) + g('fc2_b')             # (B, DIM)
        x1 = _mish(mm(g('conv1_R'), _mish(out0)) + g('conv1_b'))       # (B*N_IN, DIM)
        # conv_out(x1 + repeat(out0)) with the repeat folded into convout_R0
        t_emb = (mm(g('convout_wbd'), x1) + mm(g('convout_R0'), out0)
                 + g('convout_b'))                          # (B*N_IN, DIM)

        # ---------------- Block: pre-shortcut conv + LN + mish + 1x1 --------
        xin = x2 + t_emb
        mask5 = g('mask5')                                  # (K_SIZE, DIM)
        sc = mm(g('pre_wbd'), _tap_stack(xin, K_SIZE, mask5)) + g('pre_b')  # (B*N_SC, DIM)
        sc = _mish(_layernorm(sc, g('ln1_w'), g('ln1_b')))
        sc = mm(g('scv_wbd'), sc) + g('scv_b')

        # ---------------- SelfAttention (no batch/head loops) ---------------
        xn = _layernorm(sc, g('attn_ln_w'), g('attn_ln_b'))            # (B*N_SC, DIM)
        nq = N_HEADS * B * HID                                          # 128
        bh = B * HID                                                    # 32
        qkv = mm(g('qkvR_wbd'), xn)                                     # (nq+2*bh, DIM)
        q_rep = qkv[0:nq]                                               # (128, DIM)
        k_all = qkv[nq:nq + bh]                                         # (32, DIM)
        v_all = qkv[nq + bh:nq + 2 * bh]                                # (32, DIM)

        # in-projections: softmax scale folded into wq/bq; out_proj folded into
        # per-head value constants wvo_wide; head structure via constant hm128.
        qs = (mm(q_rep, g('wq_ts')) + g('bq_s')) * g('hm128')           # (128, DIM)
        kp = mm(k_all, g('wk_t')) + g('bk')                             # (32, DIM)
        m_wide = mm(v_all, g('wvo_wide'))                               # (32, NH*DIM)

        # ONE scores matmul over both batches and all heads (+ cross-batch mask)
        s = lax.dot_general(qs, kp, dimension_numbers=(((1,), (1,)), ((), ())),
                            preferred_element_type=jnp.float32)         # (128, 32)
        s = s + g('batch_mask')
        s_max = jnp.max(s, axis=-1, keepdims=True)
        e = jnp.exp(s - s_max)
        p_att = e * pl.reciprocal(jnp.sum(e, axis=-1, keepdims=True), approx=True)

        # head sum: 4 independent matmuls + tree add (cross-batch probs are 0)
        acc01 = (mm(p_att[0:bh], m_wide[:, 0:DIM])
                 + mm(p_att[bh:2 * bh], m_wide[:, DIM:2 * DIM]))
        acc23 = (mm(p_att[2 * bh:3 * bh], m_wide[:, 2 * DIM:3 * DIM])
                 + mm(p_att[3 * bh:4 * bh], m_wide[:, 3 * DIM:4 * DIM]))
        attn_pre = acc01 + acc23                                        # (B*HID, DIM)

        # to_out conv (bias of MHA value path + out_proj + to_out folded into
        # toout_bias host-side) and the residual inside the attention block.
        sc = mm(g('toout_wbd'), attn_pre) + g('toout_bias') + sc        # (B*N_SC, DIM)

        # ---------------- post-shortcut conv + LN + mish + res --------------
        out = mm(g('post_wbd'), _tap_stack(sc, K_SIZE, mask5)) + g('post_b')  # (B*N_OUT, DIM)
        out = _mish(_layernorm(out, g('ln2_w'), g('ln2_b')))
        h = out + mm(g('res_wbd'), x2) + g('res_b')

        # ---------------- down: Conv1d(k=3, stride=2, pad=1) ----------------
        d_full = mm(g('down_wbd'), _tap_stack(h, 3, g('mask3')))        # (B*N_OUT, DIM)
        d = mm(d_full, g('sel')) + g('down_b')                          # (B*N_OUT, DIM//2)

        # single lane-dense output slab: [h | down]
        out_ref[:, 0:DIM] = h
        out_ref[:, DIM:DIM + DIM // 2] = d

    return kernel


# --------------------- host-side parameter preprocessing --------------------
def _conv_masks(ksize, length):
    pad = (ksize - 1) // 2
    pos = np.arange(length)
    m = np.zeros((ksize, length), np.float32)
    for k in range(ksize):
        d = k - pad
        m[k] = ((pos + d >= 0) & (pos + d < length)).astype(np.float32)
    return m


def _pack_params(p):
    """One-time host-side prep: fold batch (and attention head structure) into
    block-diagonal constants and pack everything into a single lane-dense
    (rows, 128) f32 slab with per-entry row/column offsets."""
    f32 = np.float32

    def n(a):
        return np.asarray(a, f32)

    eye_b = np.eye(B, dtype=f32)

    def bd(w2):                      # (Cout, Cin) -> (B*Cout, B*Cin)
        return np.kron(eye_b, n(w2))

    def bdk(w3):                     # (Cout, Cin, K) -> (B*Cout, K*B*Cin)
        w3 = n(w3)
        return np.concatenate([bd(w3[:, :, k]) for k in range(w3.shape[2])], axis=1)

    def bcol(bias):                  # (Cout,) -> (B*Cout, 1)
        return np.tile(n(bias), B)[:, None]

    wq, wk, wv = np.split(n(p['in_proj_w']), 3, axis=0)
    bq, bk, bv = np.split(n(p['in_proj_b']), 3, axis=0)
    scale = 1.0 / float(np.sqrt(HEAD_DIM))
    wo_t = n(p['out_proj_w']).T
    wv_t = wv.T

    # to_qkv with the q-part replicated per head (rows ordered (head, batch, i))
    w_qkv = n(p['to_qkv_w'])[:, :, 0]
    q_bd = bd(w_qkv[0:HID])
    k_bd = bd(w_qkv[HID:2 * HID])
    v_bd = bd(w_qkv[2 * HID:3 * HID])
    qkvR_wbd = np.concatenate([np.tile(q_bd, (N_HEADS, 1)), k_bd, v_bd], axis=0)

    # head mask for the replicated-Q rows
    hm128 = np.zeros((N_HEADS * B * HID, DIM), f32)
    for hh in range(N_HEADS):
        hm128[hh * B * HID:(hh + 1) * B * HID,
              hh * HEAD_DIM:(hh + 1) * HEAD_DIM] = 1.0

    # additive -1e9 mask on cross-batch key lanes (rows ordered (head, batch, i))
    row_b = (np.arange(N_HEADS * B * HID) // HID) % B
    col_b = np.arange(B * HID) // HID
    batch_mask = np.where(row_b[:, None] == col_b[None, :], 0.0, -1e9).astype(f32)

    # out-projection folded into the value path: Wvo_h = wv_t[:,h] @ wo_t[h,:]
    wvo_wide = np.concatenate(
        [wv_t[:, hh * HEAD_DIM:(hh + 1) * HEAD_DIM]
         @ wo_t[hh * HEAD_DIM:(hh + 1) * HEAD_DIM, :] for hh in range(N_HEADS)],
        axis=1)                                                   # (DIM, NH*DIM)
    mha_bias = bv[None, :] @ wo_t + n(p['out_proj_b'])[None, :]   # (1, DIM)

    toout_w = n(p['to_out_w'])[:, :, 0]
    toout_wbd = bd(toout_w)
    # bias of (value-path bv + out_proj bo) pushed through the to_out conv
    toout_bias = (bcol(p['to_out_b'])
                  + np.tile(toout_w.sum(axis=1), B)[:, None] * mha_bias)  # (B*N_SC, DIM)

    convout_wbd = bd(n(p['convout_w'])[:, :, 0])
    rep0 = np.kron(eye_b, np.ones((N_IN, 1), f32))          # out0 -> per-channel replication

    sel = np.zeros((DIM, DIM // 2), f32)                    # stride-2 decimation matrix
    sel[np.arange(0, DIM, 2), np.arange(DIM // 2)] = 1.0

    entries = [
        ('fc1_wt', n(p['fc1_w']).T), ('fc1_b', n(p['fc1_b'])[None, :]),
        ('fc2_wt', n(p['fc2_w']).T), ('fc2_b', n(p['fc2_b'])[None, :]),
        ('conv1_R', bd(n(p['conv1_w'])[:, :, 0])), ('conv1_b', bcol(p['conv1_b'])),
        ('convout_wbd', convout_wbd), ('convout_R0', convout_wbd @ rep0),
        ('convout_b', bcol(p['convout_b'])),
        ('pre_wbd', bdk(p['pre_w'])), ('pre_b', bcol(p['pre_b'])),
        ('ln1_w', n(p['ln1_w'])[None, :]), ('ln1_b', n(p['ln1_b'])[None, :]),
        ('scv_wbd', bd(n(p['scv_w'])[:, :, 0])), ('scv_b', bcol(p['scv_b'])),
        ('attn_ln_w', n(p['attn_ln_w'])[None, :]), ('attn_ln_b', n(p['attn_ln_b'])[None, :]),
        ('qkvR_wbd', qkvR_wbd),
        ('wq_ts', wq.T * scale), ('bq_s', (bq * scale)[None, :]),
        ('wk_t', wk.T), ('bk', bk[None, :]),
        ('wvo_wide', wvo_wide),
        ('batch_mask', batch_mask), ('hm128', hm128),
        ('toout_wbd', toout_wbd), ('toout_bias', toout_bias),
        ('post_wbd', bdk(p['post_w'])), ('post_b', bcol(p['post_b'])),
        ('ln2_w', n(p['ln2_w'])[None, :]), ('ln2_b', n(p['ln2_b'])[None, :]),
        ('res_wbd', bd(n(p['res_w'])[:, :, 0])), ('res_b', bcol(p['res_b'])),
        ('down_wbd', bdk(p['down_w'])), ('down_b', bcol(p['down_b'])),
        ('mask5', _conv_masks(K_SIZE, DIM)),
        ('mask3', _conv_masks(3, DIM)),
        ('sel', sel),
    ]

    # ---- lane-dense shelf packing: 16 / 64 / 128-lane column bins ----------
    def _binw(c):
        return 16 if c <= 16 else (64 if c <= 64 else SLAB_W)

    prepared = []
    for name, arr in entries:
        arr = np.asarray(arr, f32)
        if arr.ndim == 1:
            arr = arr[None, :]
        assert arr.shape[1] <= SLAB_W, (name, arr.shape)
        prepared.append((name, arr))

    layout = {}
    placed = []
    row_base = 0
    for width in (SLAB_W, 64, 16):
        group = [(nm, a) for nm, a in prepared if _binw(a.shape[1]) == width]
        group.sort(key=lambda e: -e[1].shape[0])
        nbins = SLAB_W // width
        heights = [0] * nbins
        for nm, arr in group:
            r, c = arr.shape
            b_i = int(np.argmin(heights))
            r0 = row_base + heights[b_i]
            c0 = b_i * width
            layout[nm] = (r0, c0, r, c)
            placed.append((r0, c0, arr))
            heights[b_i] += r + ((-r) % 8)      # keep every entry sublane-aligned
        row_base += max(heights) if group else 0
    total_rows = max(row_base + ((-row_base) % 8), 8)

    slab = np.zeros((total_rows, SLAB_W), f32)
    for r0, c0, arr in placed:
        slab[r0:r0 + arr.shape[0], c0:c0 + arr.shape[1]] = arr
    return jnp.asarray(slab), layout


# ------------------------------- wrapper -------------------------------------
def build_downsampling_block(p):
    """Pack parameters ONCE (host-side numpy + one H2D transfer) and return a
    jitted forward fn. Do NOT call _pack_params per step."""
    slab, layout = _pack_params(p)
    embed_table = jnp.asarray(p['embed_table'], jnp.float32)
    kernel = _make_kernel(layout)

    vmem = pl.BlockSpec(memory_space=pltpu.MemorySpace.VMEM)
    # NOTE: grid=() - a single tiny block has no independent work to shard. When
    # embedded in the outer UNet, expose a leading "parallel" grid axis over
    # independent samples/steps so the second TensorCore on v7x is used.
    call = pl.pallas_call(
        kernel,
        out_shape=jax.ShapeDtypeStruct((B * N_OUT, DIM + DIM // 2), jnp.float32),
        in_specs=[vmem, vmem, vmem],
        out_specs=vmem,
    )

    @jax.jit
    def fwd(x, t, condition=None):
        del condition                               # unused by the PyTorch forward as well
        emb = embed_table[t].astype(jnp.float32)    # sinusoidal-table gather in plain JAX
        x2d = x.astype(jnp.float32).reshape(B * N_IN, DIM)
        out = call(x2d, emb, slab)
        h = out[:, :DIM].reshape(B, N_OUT, DIM)
        down = out[:, DIM:DIM + DIM // 2].reshape(B, N_OUT, DIM // 2)
        return h, down

    return fwd


_FWD_CACHE = {}


def downsampling_block(x, t, condition, p):
    """Convenience entry point; caches the packed-parameter forward per param set."""
    fwd = _FWD_CACHE.get(id(p))
    if fwd is None:
        fwd = build_downsampling_block(p)
        _FWD_CACHE[id(p)] = fwd
    return fwd(x, t, condition)


# ------------------------------ parameter init ------------------------------
def init_params(key):
    keys = iter(jax.random.split(key, 40))

    def nrm(shape, scale=0.1):
        return jax.random.normal(next(keys), shape, jnp.float32) * scale

    p = {}
    # TimeEmbedding
    p['fc1_w'] = nrm((DIM_LATENT, DIM_EMBED)); p['fc1_b'] = nrm((DIM_LATENT,))
    p['fc2_w'] = nrm((DIM, DIM_LATENT));       p['fc2_b'] = nrm((DIM,))
    p['conv1_w'] = nrm((N_IN, 1, 1));          p['conv1_b'] = nrm((N_IN,))
    p['convout_w'] = nrm((N_IN, N_IN, 1));     p['convout_b'] = nrm((N_IN,))
    # sinusoidal embedding table (same formula as TimeEmbedding.embed_table)
    t_ids = jnp.arange(N_DIFF, dtype=jnp.float32) + 1.0
    half = DIM_EMBED // 2
    freq = jnp.exp(jnp.arange(half, dtype=jnp.float32) * -(10.0 / (half - 1)))
    ang = t_ids[:, None] * freq[None, :]
    p['embed_table'] = jnp.concatenate([jnp.sin(ang), jnp.cos(ang)], axis=-1)
    # Block
    p['pre_w'] = nrm((N_SC, N_IN, K_SIZE));    p['pre_b'] = nrm((N_SC,))
    p['ln1_w'] = jnp.ones((DIM,), jnp.float32); p['ln1_b'] = jnp.zeros((DIM,), jnp.float32)
    p['scv_w'] = nrm((N_SC, N_SC, 1));         p['scv_b'] = nrm((N_SC,))
    p['post_w'] = nrm((N_OUT, N_SC, K_SIZE));  p['post_b'] = nrm((N_OUT,))
    p['ln2_w'] = jnp.ones((DIM,), jnp.float32); p['ln2_b'] = jnp.zeros((DIM,), jnp.float32)
    p['res_w'] = nrm((N_OUT, N_IN, 1));        p['res_b'] = nrm((N_OUT,))
    # SelfAttention
    p['attn_ln_w'] = jnp.ones((DIM,), jnp.float32); p['attn_ln_b'] = jnp.zeros((DIM,), jnp.float32)
    p['to_qkv_w'] = nrm((3 * HID, N_SC, 1))
    p['to_out_w'] = nrm((N_SC, HID, 1));       p['to_out_b'] = nrm((N_SC,))
    p['in_proj_w'] = nrm((3 * DIM, DIM));      p['in_proj_b'] = nrm((3 * DIM,))
    p['out_proj_w'] = nrm((DIM, DIM));         p['out_proj_b'] = nrm((DIM,))
    # DownsamplingBlock.down
    p['down_w'] = nrm((N_OUT, N_OUT, 3));      p['down_b'] = nrm((N_OUT,))
    return p


# ------------------------- pure-JAX reference (for checking) ----------------
def ref_conv1d(x, w, b, stride=1, padding=0):
    K = w.shape[2]
    xp = jnp.pad(x, ((0, 0), (0, 0), (padding, padding)))
    l_out = (x.shape[2] + 2 * padding - K) // stride + 1
    out = jnp.zeros((x.shape[0], w.shape[0], l_out), jnp.float32)
    for k in range(K):
        xs = jax.lax.slice_in_dim(xp, k, k + stride * (l_out - 1) + 1, stride, axis=2)
        out = out + jnp.einsum('bcl,oc->bol', xs, w[:, :, k])
    if b is not None:
        out = out + b[None, :, None]
    return out


def ref_mish(x):
    return x * jnp.tanh(jnp.log(1.0 + jnp.exp(x)))


def ref_layernorm(x, w, b):
    mu = x.mean(-1, keepdims=True)
    var = ((x - mu) ** 2).mean(-1, keepdims=True)
    return (x - mu) / jnp.sqrt(var + LN_EPS) * w + b


def ref_forward(x, t, p):
    emb = p['embed_table'][t]
    out0 = ref_mish(emb @ p['fc1_w'].T + p['fc1_b'])
    out0 = out0 @ p['fc2_w'].T + p['fc2_b']
    out0 = out0[:, None, :]
    x1 = ref_mish(ref_conv1d(ref_mish(out0), p['conv1_w'], p['conv1_b']))
    t_emb = ref_conv1d(x1 + jnp.tile(out0, (1, N_IN, 1)), p['convout_w'], p['convout_b'])

    xin = x + t_emb
    sc = ref_conv1d(xin, p['pre_w'], p['pre_b'], padding=K_SIZE // 2)
    sc = ref_mish(ref_layernorm(sc, p['ln1_w'], p['ln1_b']))
    sc = ref_conv1d(sc, p['scv_w'], p['scv_b'])

    xn = ref_layernorm(sc, p['attn_ln_w'], p['attn_ln_b'])
    qkv = ref_conv1d(xn, p['to_qkv_w'], None)
    q, k, v = qkv[:, :HID], qkv[:, HID:2 * HID], qkv[:, 2 * HID:]
    wq, wk, wv = jnp.split(p['in_proj_w'], 3, axis=0)
    bq, bk, bv = jnp.split(p['in_proj_b'], 3, axis=0)
    qp, kp, vp = q @ wq.T + bq, k @ wk.T + bk, v @ wv.T + bv
    heads = lambda z: z.reshape(B, HID, N_HEADS, HEAD_DIM).transpose(0, 2, 1, 3)
    qh, kh, vh = heads(qp), heads(kp), heads(vp)
    scores = jnp.einsum('bhqd,bhkd->bhqk', qh, kh) / jnp.sqrt(float(HEAD_DIM))
    pa = jax.nn.softmax(scores, axis=-1)
    ao = jnp.einsum('bhqk,bhkd->bhqd', pa, vh).transpose(0, 2, 1, 3).reshape(B, HID, DIM)
    ao = ao @ p['out_proj_w'].T + p['out_proj_b']
    ao = ref_conv1d(ao, p['to_out_w'], p['to_out_b'])
    sc = ao + sc

    out = ref_conv1d(sc, p['post_w'], p['post_b'], padding=K_SIZE // 2)
    out = ref_mish(ref_layernorm(out, p['ln2_w'], p['ln2_b']))
    h = out + ref_conv1d(x, p['res_w'], p['res_b'])
    down = ref_conv1d(h, p['down_w'], p['down_b'], stride=2, padding=1)
    return h, down


# --------------------------------- main --------------------------------------
if __name__ == "__main__":
    key = jax.random.PRNGKey(0)
    k_x, k_t, k_p, k_c = jax.random.split(key, 4)
    params = init_params(k_p)

    x = jax.random.normal(k_x, (B, N_IN, DIM), jnp.float32)
    t = jax.random.randint(k_t, (B,), 0, N_DIFF)
    condition = jax.random.normal(k_c, (B, N_IN, DIM), jnp.float32)  # unused in forward

    fwd = build_downsampling_block(params)      # one-time pack + jit
    h, down = fwd(x, t, condition)
    jax.block_until_ready((h, down))

    h_ref, down_ref = ref_forward(x, t, params)
    np.testing.assert_allclose(np.asarray(h), np.asarray(h_ref), rtol=5e-3, atol=5e-3)
    np.testing.assert_allclose(np.asarray(down), np.asarray(down_ref), rtol=5e-3, atol=5e-3)

    print("KERNEL_OK")
</pallas_src>

<mosaic_0001>
module attributes {stable_mosaic.version = 11 : i64} {
  func.func @kernel(%arg0: memref<8x16xf32, #tpu.memory_space<vmem>>, %arg1: memref<2x64xf32, #tpu.memory_space<vmem>>, %arg2: memref<392x128xf32, #tpu.memory_space<vmem>>, %arg3: memref<12x24xf32, #tpu.memory_space<vmem>>) attributes {dimension_semantics = [], scalar_prefetch = 0 : i64, scratch_operands = 0 : i64, tpu.core_type = #tpu.core_type<tc>} {
    %c0 = arith.constant 0 : index
    %c0_0 = arith.constant 0 : index
    %0 = vector.load %arg0[%c0, %c0_0] : memref<8x16xf32, #tpu.memory_space<vmem>>, vector<8x16xf32>
    %c0_1 = arith.constant 0 : index
    %c0_2 = arith.constant 0 : index
    %1 = vector.load %arg1[%c0_1, %c0_2] : memref<2x64xf32, #tpu.memory_space<vmem>>, vector<2x64xf32>
    %c0_3 = arith.constant 0 : index
    %c0_4 = arith.constant 0 : index
    %2 = vector.load %arg2[%c0_3, %c0_4] : memref<392x128xf32, #tpu.memory_space<vmem>>, vector<64x128xf32>
    %cst = arith.constant dense<0.000000e+00> : vector<2x128xf32>
    %3 = tpu.matmul %1, %2, %cst {dimension_numbers = #tpu.dot_dimension_numbers<[1], [0], [0], [1], [0, 0, 1, 1], [], []>} : vector<2x64xf32>, vector<64x128xf32>, vector<2x128xf32> -> vector<2x128xf32>
    %c64 = arith.constant 64 : index
    %c0_5 = arith.constant 0 : index
    %4 = vector.load %arg2[%c64, %c0_5] : memref<392x128xf32, #tpu.memory_space<vmem>>, vector<1x128xf32>
    %5 = vector.broadcast %4 : vector<1x128xf32> to vector<2x128xf32>
    %6 = arith.addf %3, %5 : vector<2x128xf32>
    %cst_6 = arith.constant 2.000000e+01 : f32
    %7 = vector.broadcast %cst_6 : f32 to vector<2x128xf32>
    %8 = arith.minimumf %6, %7 : vector<2x128xf32>
    %9 = math.exp %8 : vector<2x128xf32>
    %cst_7 = arith.constant 2.000000e+00 : f32
    %10 = vector.broadcast %cst_7 : f32 to vector<2x128xf32>
    %11 = arith.addf %9, %10 : vector<2x128xf32>
    %12 = arith.mulf %9, %11 : vector<2x128xf32>
    %cst_8 = arith.constant 2.000000e+00 : f32
    %13 = vector.broadcast %cst_8 : f32 to vector<2x128xf32>
    %14 = arith.addf %12, %13 : vector<2x128xf32>
    %15 = tpu.reciprocal %14 {approx = true} : vector<2x128xf32> -> vector<2x128xf32>
    %16 = arith.mulf %12, %15 : vector<2x128xf32>
    %17 = arith.mulf %6, %16 : vector<2x128xf32>
    %c200 = arith.constant 200 : index
    %c16 = arith.constant 16 : index
    %18 = vector.load %arg2[%c200, %c16] : memref<392x128xf32, #tpu.memory_space<vmem>>, vector<128x16xf32>
    %cst_9 = arith.constant dense<0.000000e+00> : vector<2x16xf32>
    %19 = tpu.matmul %17, %18, %cst_9 {dimension_numbers = #tpu.dot_dimension_numbers<[1], [0], [0], [1], [0, 0, 1, 1], [], []>} : vector<2x128xf32>, vector<128x16xf32>, vector<2x16xf32> -> vector<2x16xf32>
    %c240 = arith.constant 240 : index
    %c112 = arith.constant 112 : index
    %20 = vector.load %arg2[%c240, %c112] : memref<392x128xf32, #tpu.memory_space<vmem>>, vector<1x16xf32>
    %21 = vector.broadcast %20 : vector<1x16xf32> to vector<2x16xf32>
    %22 = arith.addf %19, %21 : vector<2x16xf32>
    %c232 = arith.constant 232 : index
    %c64_10 = arith.constant 64 : index
    %23 = vector.load %arg2[%c232, %c64_10] : memref<392x128xf32, #tpu.memory_space<vmem>>, vector<8x2xf32>
    %cst_11 = arith.constant 2.000000e+01 : f32
    %24 = vector.broadcast %cst_11 : f32 to vector<2x16xf32>
    %25 = arith.minimumf %22, %24 : vector<2x16xf32>
    %26 = math.exp %25 : vector<2x16xf32>
    %cst_12 = arith.constant 2.000000e+00 : f32
    %27 = vector.broadcast %cst_12 : f32 to vector<2x16xf32>
    %28 = arith.addf %26, %27 : vector<2x16xf32>
    %29 = arith.mulf %26, %28 : vector<2x16xf32>
    %cst_13 = arith.constant 2.000000e+00 : f32
    %30 = vector.broadcast %cst_13 : f32 to vector<2x16xf32>
    %31 = arith.addf %29, %30 : vector<2x16xf32>
    %32 = tpu.reciprocal %31 {approx = true} : vector<2x16xf32> -> vector<2x16xf32>
    %33 = arith.mulf %29, %32 : vector<2x16xf32>
    %34 = arith.mulf %22, %33 : vector<2x16xf32>
    %cst_14 = arith.constant dense<0.000000e+00> : vector<8x16xf32>
    %35 = tpu.matmul %23, %34, %cst_14 {dimension_numbers = #tpu.dot_dimension_numbers<[1], [0], [0], [1], [0, 0, 1, 1], [], []>} : vector<8x2xf32>, vector<2x16xf32>, vector<8x16xf32> -> vector<8x16xf32>
    %c232_15 = arith.constant 232 : index
    %c80 = arith.constant 80 : index
    %36 = vector.load %arg2[%c232_15, %c80] : memref<392x128xf32, #tpu.memory_space<vmem>>, vector<8x1xf32>
    %37 = vector.broadcast %36 : vector<8x1xf32> to vector<8x16xf32>
    %38 = arith.addf %35, %37 : vector<8x16xf32>
    %cst_16 = arith.constant 2.000000e+01 : f32
    %39 = vector.broadcast %cst_16 : f32 to vector<8x16xf32>
    %40 = arith.minimumf %38, %39 : vector<8x16xf32>
    %41 = math.exp %40 : vector<8x16xf32>
    %cst_17 = arith.constant 2.000000e+00 : f32
    %42 = vector.broadcast %cst_17 : f32 to vector<8x16xf32>
    %43 = arith.addf %41, %42 : vector<8x16xf32>
    %44 = arith.mulf %41, %43 : vector<8x16xf32>
    %cst_18 = arith.constant 2.000000e+00 : f32
    %45 = vector.broadcast %cst_18 : f32 to vector<8x16xf32>
    %46 = arith.addf %44, %45 : vector<8x16xf32>
    %47 = tpu.reciprocal %46 {approx = true} : vector<8x16xf32> -> vector<8x16xf32>
    %48 = arith.mulf %44, %47 : vector<8x16xf32>
    %49 = arith.mulf %38, %48 : vector<8x16xf32>
    %c232_19 = arith.constant 232 : index
    %c96 = arith.constant 96 : index
    %50 = vector.load %arg2[%c232_19, %c96] : memref<392x128xf32, #tpu.memory_space<vmem>>, vector<8x8xf32>
    %cst_20 = arith.constant dense<0.000000e+00> : vector<8x16xf32>
    %51 = tpu.matmul %50, %49, %cst_20 {dimension_numbers = #tpu.dot_dimension_numbers<[1], [0], [0], [1], [0, 0, 1, 1], [], []>} : vector<8x8xf32>, vector<8x16xf32>, vector<8x16xf32> -> vector<8x16xf32>
    %c232_21 = arith.constant 232 : index
    %c112_22 = arith.constant 112 : index
    %52 = vector.load %arg2[%c232_21, %c112_22] : memref<392x128xf32, #tpu.memory_space<vmem>>, vector<8x2xf32>
    %cst_23 = arith.constant dense<0.000000e+00> : vector<8x16xf32>
    %53 = tpu.matmul %52, %22, %cst_23 {dimension_numbers = #tpu.dot_dimension_numbers<[1], [0], [0], [1], [0, 0, 1, 1], [], []>} : vector<8x2xf32>, vector<2x16xf32>, vector<8x16xf32> -> vector<8x16xf32>
    %54 = arith.addf %51, %53 : vector<8x16xf32>
    %c240_24 = arith.constant 240 : index
    %c64_25 = arith.constant 64 : index
    %55 = vector.load %arg2[%c240_24, %c64_25] : memref<392x128xf32, #tpu.memory_space<vmem>>, vector<8x1xf32>
    %56 = vector.broadcast %55 : vector<8x1xf32> to vector<8x16xf32>
    %57 = arith.addf %54, %56 : vector<8x16xf32>
    %58 = arith.addf %0, %57 : vector<8x16xf32>
    %c240_26 = arith.constant 240 : index
    %c80_27 = arith.constant 80 : index
    %59 = vector.load %arg2[%c240_26, %c80_27] : memref<392x128xf32, #tpu.memory_space<vmem>>, vector<5x16xf32>
    %c88 = arith.constant 88 : index
    %c64_28 = arith.constant 64 : index
    %60 = vector.load %arg2[%c88, %c64_28] : memref<392x128xf32, #tpu.memory_space<vmem>>, vector<12x40xf32>
    %c2_i32 = arith.constant 2 : i32
    %61 = tpu.dynamic_rotate %58 by %c2_i32 dim 1 : vector<8x16xf32>, i32 -> vector<8x16xf32>
    %62 = vector.extract_strided_slice %59 {offsets = [0, 0], sizes = [1, 16], strides = [1, 1]} : vector<5x16xf32> to vector<1x16xf32>
    %63 = vector.broadcast %62 : vector<1x16xf32> to vector<8x16xf32>
    %64 = arith.mulf %61, %63 : vector<8x16xf32>
    %c1_i32 = arith.constant 1 : i32
    %65 = tpu.dynamic_rotate %58 by %c1_i32 dim 1 : vector<8x16xf32>, i32 -> vector<8x16xf32>
    %66 = vector.extract_strided_slice %59 {offsets = [1, 0], sizes = [1, 16], strides = [1, 1]} : vector<5x16xf32> to vector<1x16xf32>
    %67 = vector.broadcast %66 : vector<1x16xf32> to vector<8x16xf32>
    %68 = arith.mulf %65, %67 : vector<8x16xf32>
    %c15_i32 = arith.constant 15 : i32
    %69 = tpu.dynamic_rotate %58 by %c15_i32 dim 1 : vector<8x16xf32>, i32 -> vector<8x16xf32>
    %70 = vector.extract_strided_slice %59 {offsets = [3, 0], sizes = [1, 16], strides = [1, 1]} : vector<5x16xf32> to vector<1x16xf32>
    %71 = vector.broadcast %70 : vector<1x16xf32> to vector<8x16xf32>
    %72 = arith.mulf %69, %71 : vector<8x16xf32>
    %c14_i32 = arith.constant 14 : i32
    %73 = tpu.dynamic_rotate %58 by %c14_i32 dim 1 : vector<8x16xf32>, i32 -> vector<8x16xf32>
    %74 = vector.extract_strided_slice %59 {offsets = [4, 0], sizes = [1, 16], strides = [1, 1]} : vector<5x16xf32> to vector<1x16xf32>
    %75 = vector.broadcast %74 : vector<1x16xf32> to vector<8x16xf32>
    %76 = arith.mulf %73, %75 : vector<8x16xf32>
    %77 = tpu.concatenate %64, %68, %58, %72, %76 in 0 : vector<8x16xf32>, vector<8x16xf32>, vector<8x16xf32>, vector<8x16xf32>, vector<8x16xf32> -> vector<40x16xf32>
    %cst_29 = arith.constant dense<0.000000e+00> : vector<12x16xf32>
    %78 = tpu.matmul %60, %77, %cst_29 {dimension_numbers = #tpu.dot_dimension_numbers<[1], [0], [0], [1], [0, 0, 1, 1], [], []>} : vector<12x40xf32>, vector<40x16xf32>, vector<12x16xf32> -> vector<12x16xf32>
    %c200_30 = arith.constant 200 : index
    %c96_31 = arith.constant 96 : index
    %79 = vector.load %arg2[%c200_30, %c96_31] : memref<392x128xf32, #tpu.memory_space<vmem>>, vector<12x1xf32>
    %80 = vector.broadcast %79 : vector<12x1xf32> to vector<12x16xf32>
    %81 = arith.addf %78, %80 : vector<12x16xf32>
    %c248 = arith.constant 248 : index
    %c48 = arith.constant 48 : index
    %82 = vector.load %arg2[%c248, %c48] : memref<392x128xf32, #tpu.memory_space<vmem>>, vector<1x16xf32>
    %c248_32 = arith.constant 248 : index
    %c64_33 = arith.constant 64 : index
    %83 = vector.load %arg2[%c248_32, %c64_33] : memref<392x128xf32, #tpu.memory_space<vmem>>, vector<1x16xf32>
    %cst_34 = arith.constant dense<0.000000e+00> : vector<12xf32>
    %84 = vector.multi_reduction <add>, %81, %cst_34 [1] : vector<12x16xf32> to vector<12xf32>
    %85 = vector.shape_cast %84 : vector<12xf32> to vector<12x1xf32>
    %cst_35 = arith.constant 1.600000e+01 : f32
    %86 = vector.broadcast %cst_35 : f32 to vector<12x1xf32>
    %87 = arith.divf %85, %86 : vector<12x1xf32>
    %88 = vector.broadcast %87 : vector<12x1xf32> to vector<12x16xf32>
    %89 = arith.subf %81, %88 : vector<12x16xf32>
    %90 = arith.mulf %89, %89 : vector<12x16xf32>
    %cst_36 = arith.constant dense<0.000000e+00> : vector<12xf32>
    %91 = vector.multi_reduction <add>, %90, %cst_36 [1] : vector<12x16xf32> to vector<12xf32>
    %92 = vector.shape_cast %91 : vector<12xf32> to vector<12x1xf32>
    %cst_37 = arith.constant 1.600000e+01 : f32
    %93 = vector.broadcast %cst_37 : f32 to vector<12x1xf32>
    %94 = arith.divf %92, %93 : vector<12x1xf32>
    %95 = vector.broadcast %87 : vector<12x1xf32> to vector<12x16xf32>
    %96 = arith.subf %81, %95 : vector<12x16xf32>
    %cst_38 = arith.constant 9.99999974E-6 : f32
    %97 = vector.broadcast %cst_38 : f32 to vector<12x1xf32>
    %98 = arith.addf %94, %97 : vector<12x1xf32>
    %99 = math.rsqrt %98 : vector<12x1xf32>
    %100 = vector.broadcast %99 : vector<12x1xf32> to vector<12x16xf32>
    %101 = arith.mulf %96, %100 : vector<12x16xf32>
    %102 = vector.broadcast %82 : vector<1x16xf32> to vector<12x16xf32>
    %103 = arith.mulf %101, %102 : vector<12x16xf32>
    %104 = vector.broadcast %83 : vector<1x16xf32> to vector<12x16xf32>
    %105 = arith.addf %103, %104 : vector<12x16xf32>
    %cst_39 = arith.constant 2.000000e+01 : f32
    %106 = vector.broadcast %cst_39 : f32 to vector<12x16xf32>
    %107 = arith.minimumf %105, %106 : vector<12x16xf32>
    %108 = math.exp %107 : vector<12x16xf32>
    %cst_40 = arith.constant 2.000000e+00 : f32
    %109 = vector.broadcast %cst_40 : f32 to vector<12x16xf32>
    %110 = arith.addf %108, %109 : vector<12x16xf32>
    %111 = arith.mulf %108, %110 : vector<12x16xf32>
    %cst_41 = arith.constant 2.000000e+00 : f32
    %112 = vector.broadcast %cst_41 : f32 to vector<12x16xf32>
    %113 = arith.addf %111, %112 : vector<12x16xf32>
    %114 = tpu.reciprocal %113 {approx = true} : vector<12x16xf32> -> vector<12x16xf32>
    %115 = arith.mulf %111, %114 : vector<12x16xf32>
    %116 = arith.mulf %105, %115 : vector<12x16xf32>
    %c200_42 = arith.constant 200 : index
    %c112_43 = arith.constant 112 : index
    %117 = vector.load %arg2[%c200_42, %c112_43] : memref<392x128xf32, #tpu.memory_space<vmem>>, vector<12x12xf32>
    %cst_44 = arith.constant dense<0.000000e+00> : vector<12x16xf32>
    %118 = tpu.matmul %117, %116, %cst_44 {dimension_numbers = #tpu.dot_dimension_numbers<[1], [0], [0], [1], [0, 0, 1, 1], [], []>} : vector<12x12xf32>, vector<12x16xf32>, vector<12x16xf32> -> vector<12x16xf32>
    %c216 = arith.constant 216 : index
    %c48_45 = arith.constant 48 : index
    %119 = vector.load %arg2[%c216, %c48_45] : memref<392x128xf32, #tpu.memory_space<vmem>>, vector<12x1xf32>
    %120 = vector.broadcast %119 : vector<12x1xf32> to vector<12x16xf32>
    %121 = arith.addf %118, %120 : vector<12x16xf32>
    %c248_46 = arith.constant 248 : index
    %c80_47 = arith.constant 80 : index
    %122 = vector.load %arg2[%c248_46, %c80_47] : memref<392x128xf32, #tpu.memory_space<vmem>>, vector<1x16xf32>
    %c248_48 = arith.constant 248 : index
    %c96_49 = arith.constant 96 : index
    %123 = vector.load %arg2[%c248_48, %c96_49] : memref<392x128xf32, #tpu.memory_space<vmem>>, vector<1x16xf32>
    %cst_50 = arith.constant dense<0.000000e+00> : vector<12xf32>
    %124 = vector.multi_reduction <add>, %121, %cst_50 [1] : vector<12x16xf32> to vector<12xf32>
    %125 = vector.shape_cast %124 : vector<12xf32> to vector<12x1xf32>
    %cst_51 = arith.constant 1.600000e+01 : f32
    %126 = vector.broadcast %cst_51 : f32 to vector<12x1xf32>
    %127 = arith.divf %125, %126 : vector<12x1xf32>
    %128 = vector.broadcast %127 : vector<12x1xf32> to vector<12x16xf32>
    %129 = arith.subf %121, %128 : vector<12x16xf32>
    %130 = arith.mulf %129, %129 : vector<12x16xf32>
    %cst_52 = arith.constant dense<0.000000e+00> : vector<12xf32>
    %131 = vector.multi_reduction <add>, %130, %cst_52 [1] : vector<12x16xf32> to vector<12xf32>
    %132 = vector.shape_cast %131 : vector<12xf32> to vector<12x1xf32>
    %cst_53 = arith.constant 1.600000e+01 : f32
    %133 = vector.broadcast %cst_53 : f32 to vector<12x1xf32>
    %134 = arith.divf %132, %133 : vector<12x1xf32>
    %135 = vector.broadcast %127 : vector<12x1xf32> to vector<12x16xf32>
    %136 = arith.subf %121, %135 : vector<12x16xf32>
    %cst_54 = arith.constant 9.99999974E-6 : f32
    %137 = vector.broadcast %cst_54 : f32 to vector<12x1xf32>
    %138 = arith.addf %134, %137 : vector<12x1xf32>
    %139 = math.rsqrt %138 : vector<12x1xf32>
    %140 = vector.broadcast %139 : vector<12x1xf32> to vector<12x16xf32>
    %141 = arith.mulf %136, %140 : vector<12x16xf32>
    %142 = vector.broadcast %122 : vector<1x16xf32> to vector<12x16xf32>
    %143 = arith.mulf %141, %142 : vector<12x16xf32>
    %144 = vector.broadcast %123 : vector<1x16xf32> to vector<12x16xf32>
    %145 = arith.addf %143, %144 : vector<12x16xf32>
    %c200_55 = arith.constant 200 : index
    %c0_56 = arith.constant 0 : index
    %146 = vector.load %arg2[%c200_55, %c0_56] : memref<392x128xf32, #tpu.memory_space<vmem>>, vector<192x12xf32>
    %cst_57 = arith.constant dense<0.000000e+00> : vector<192x16xf32>
    %147 = tpu.matmul %146, %145, %cst_57 {dimension_numbers = #tpu.dot_dimension_numbers<[1], [0], [0], [1], [0, 0, 1, 1], [], []>} : vector<192x12xf32>, vector<12x16xf32>, vector<192x16xf32> -> vector<192x16xf32>
    %148 = vector.extract_strided_slice %147 {offsets = [0, 0], sizes = [128, 16], strides = [1, 1]} : vector<192x16xf32> to vector<128x16xf32>
    %149 = vector.extract_strided_slice %147 {offsets = [128, 0], sizes = [32, 16], strides = [1, 1]} : vector<192x16xf32> to vector<32x16xf32>
    %150 = vector.extract_strided_slice %147 {offsets = [160, 0], sizes = [32, 16], strides = [1, 1]} : vector<192x16xf32> to vector<32x16xf32>
    %c200_58 = arith.constant 200 : index
    %c48_59 = arith.constant 48 : index
    %151 = vector.load %arg2[%c200_58, %c48_59] : memref<392x128xf32, #tpu.memory_space<vmem>>, vector<16x16xf32>
    %cst_60 = arith.constant dense<0.000000e+00> : vector<128x16xf32>
    %152 = tpu.matmul %148, %151, %cst_60 {dimension_numbers = #tpu.dot_dimension_numbers<[1], [0], [0], [1], [0, 0, 1, 1], [], []>} : vector<128x16xf32>, vector<16x16xf32>, vector<128x16xf32> -> vector<128x16xf32>
    %c248_61 = arith.constant 248 : index
    %c112_62 = arith.constant 112 : index
    %153 = vector.load %arg2[%c248_61, %c112_62] : memref<392x128xf32, #tpu.memory_space<vmem>>, vector<1x16xf32>
    %154 = vector.broadcast %153 : vector<1x16xf32> to vector<128x16xf32>
    %155 = arith.addf %152, %154 : vector<128x16xf32>
    %c200_63 = arith.constant 200 : index
    %c32 = arith.constant 32 : index
    %156 = vector.load %arg2[%c200_63, %c32] : memref<392x128xf32, #tpu.memory_space<vmem>>, vector<128x16xf32>
    %157 = arith.mulf %155, %156 : vector<128x16xf32>
    %c200_64 = arith.constant 200 : index
    %c64_65 = arith.constant 64 : index
    %158 = vector.load %arg2[%c200_64, %c64_65] : memref<392x128xf32, #tpu.memory_space<vmem>>, vector<16x16xf32>
    %cst_66 = arith.constant dense<0.000000e+00> : vector<32x16xf32>
    %159 = tpu.matmul %149, %158, %cst_66 {dimension_numbers = #tpu.dot_dimension_numbers<[1], [0], [0], [1], [0, 0, 1, 1], [], []>} : vector<32x16xf32>, vector<16x16xf32>, vector<32x16xf32> -> vector<32x16xf32>
    %c256 = arith.constant 256 : index
    %c48_67 = arith.constant 48 : index
    %160 = vector.load %arg2[%c256, %c48_67] : memref<392x128xf32, #tpu.memory_space<vmem>>, vector<1x16xf32>
    %161 = vector.broadcast %160 : vector<1x16xf32> to vector<32x16xf32>
    %162 = arith.addf %159, %161 : vector<32x16xf32>
    %c72 = arith.constant 72 : index
    %c64_68 = arith.constant 64 : index
    %163 = vector.load %arg2[%c72, %c64_68] : memref<392x128xf32, #tpu.memory_space<vmem>>, vector<16x64xf32>
    %cst_69 = arith.constant dense<0.000000e+00> : vector<32x64xf32>
    %164 = tpu.matmul %150, %163, %cst_69 {dimension_numbers = #tpu.dot_dimension_numbers<[1], [0], [0], [1], [0, 0, 1, 1], [], []>} : vector<32x16xf32>, vector<16x64xf32>, vector<32x64xf32> -> vector<32x64xf32>
    %cst_70 = arith.constant dense<0.000000e+00> : vector<128x32xf32>
    %165 = tpu.matmul %157, %162, %cst_70 {dimension_numbers = #tpu.dot_dimension_numbers<[1], [1], [0], [0], [0, 0, 1, 0], [], []>} : vector<128x16xf32>, vector<32x16xf32>, vector<128x32xf32> -> vector<128x32xf32>
    %c72_71 = arith.constant 72 : index
    %c0_72 = arith.constant 0 : index
    %166 = vector.load %arg2[%c72_71, %c0_72] : memref<392x128xf32, #tpu.memory_space<vmem>>, vector<128x32xf32>
    %167 = arith.addf %165, %166 : vector<128x32xf32>
    %cst_73 = arith.constant dense<0xFF800000> : vector<128xf32>
    %168 = vector.multi_reduction <maximumf>, %167, %cst_73 [1] : vector<128x32xf32> to vector<128xf32>
    %169 = vector.shape_cast %168 : vector<128xf32> to vector<128x1xf32>
    %170 = vector.broadcast %169 : vector<128x1xf32> to vector<128x32xf32>
    %171 = arith.subf %167, %170 : vector<128x32xf32>
    %172 = math.exp %171 : vector<128x32xf32>
    %cst_74 = arith.constant dense<0.000000e+00> : vector<128xf32>
    %173 = vector.multi_reduction <add>, %172, %cst_74 [1] : vector<128x32xf32> to vector<128xf32>
    %174 = vector.shape_cast %173 : vector<128xf32> to vector<128x1xf32>
    %175 = tpu.reciprocal %174 {approx = true} : vector<128x1xf32> -> vector<128x1xf32>
    %176 = vector.broadcast %175 : vector<128x1xf32> to vector<128x32xf32>
    %177 = arith.mulf %172, %176 : vector<128x32xf32>
    %178 = vector.extract_strided_slice %177 {offsets = [0, 0], sizes = [32, 32], strides = [1, 1]} : vector<128x32xf32> to vector<32x32xf32>
    %179 = vector.extract_strided_slice %164 {offsets = [0, 0], sizes = [32, 16], strides = [1, 1]} : vector<32x64xf32> to vector<32x16xf32>
    %cst_75 = arith.constant dense<0.000000e+00> : vector<32x16xf32>
    %180 = tpu.matmul %178, %179, %cst_75 {dimension_numbers = #tpu.dot_dimension_numbers<[1], [0], [0], [1], [0, 0, 1, 1], [], []>} : vector<32x32xf32>, vector<32x16xf32>, vector<32x16xf32> -> vector<32x16xf32>
    %181 = vector.extract_strided_slice %177 {offsets = [32, 0], sizes = [32, 32], strides = [1, 1]} : vector<128x32xf32> to vector<32x32xf32>
    %182 = vector.extract_strided_slice %164 {offsets = [0, 16], sizes = [32, 16], strides = [1, 1]} : vector<32x64xf32> to vector<32x16xf32>
    %cst_76 = arith.constant dense<0.000000e+00> : vector<32x16xf32>
    %183 = tpu.matmul %181, %182, %cst_76 {dimension_numbers = #tpu.dot_dimension_numbers<[1], [0], [0], [1], [0, 0, 1, 1], [], []>} : vector<32x32xf32>, vector<32x16xf32>, vector<32x16xf32> -> vector<32x16xf32>
    %184 = arith.addf %180, %183 : vector<32x16xf32>
    %185 = vector.extract_strided_slice %177 {offsets = [64, 0], sizes = [32, 32], strides = [1, 1]} : vector<128x32xf32> to vector<32x32xf32>
    %186 = vector.extract_strided_slice %164 {offsets = [0, 32], sizes = [32, 16], strides = [1, 1]} : vector<32x64xf32> to vector<32x16xf32>
    %cst_77 = arith.constant dense<0.000000e+00> : vector<32x16xf32>
    %187 = tpu.matmul %185, %186, %cst_77 {dimension_numbers = #tpu.dot_dimension_numbers<[1], [0], [0], [1], [0, 0, 1, 1], [], []>} : vector<32x32xf32>, vector<32x16xf32>, vector<32x16xf32> -> vector<32x16xf32>
    %188 = vector.extract_strided_slice %177 {offsets = [96, 0], sizes = [32, 32], strides = [1, 1]} : vector<128x32xf32> to vector<32x32xf32>
    %189 = vector.extract_strided_slice %164 {offsets = [0, 48], sizes = [32, 16], strides = [1, 1]} : vector<32x64xf32> to vector<32x16xf32>
    %cst_78 = arith.constant dense<0.000000e+00> : vector<32x16xf32>
    %190 = tpu.matmul %188, %189, %cst_78 {dimension_numbers = #tpu.dot_dimension_numbers<[1], [0], [0], [1], [0, 0, 1, 1], [], []>} : vector<32x32xf32>, vector<32x16xf32>, vector<32x16xf32> -> vector<32x16xf32>
    %191 = arith.addf %187, %190 : vector<32x16xf32>
    %192 = arith.addf %184, %191 : vector<32x16xf32>
    %c104 = arith.constant 104 : index
    %c64_79 = arith.constant 64 : index
    %193 = vector.load %arg2[%c104, %c64_79] : memref<392x128xf32, #tpu.memory_space<vmem>>, vector<12x32xf32>
    %cst_80 = arith.constant dense<0.000000e+00> : vector<12x16xf32>
    %194 = tpu.matmul %193, %192, %cst_80 {dimension_numbers = #tpu.dot_dimension_numbers<[1], [0], [0], [1], [0, 0, 1, 1], [], []>} : vector<12x32xf32>, vector<32x16xf32>, vector<12x16xf32> -> vector<12x16xf32>
    %c216_81 = arith.constant 216 : index
    %c64_82 = arith.constant 64 : index
    %195 = vector.load %arg2[%c216_81, %c64_82] : memref<392x128xf32, #tpu.memory_space<vmem>>, vector<12x16xf32>
    %196 = arith.addf %194, %195 : vector<12x16xf32>
    %197 = arith.addf %196, %121 : vector<12x16xf32>
    %c120 = arith.constant 120 : index
    %c64_83 = arith.constant 64 : index
    %198 = vector.load %arg2[%c120, %c64_83] : memref<392x128xf32, #tpu.memory_space<vmem>>, vector<12x60xf32>
    %c2_i32_84 = arith.constant 2 : i32
    %199 = tpu.dynamic_rotate %197 by %c2_i32_84 dim 1 : vector<12x16xf32>, i32 -> vector<12x16xf32>
    %200 = vector.extract_strided_slice %59 {offsets = [0, 0], sizes = [1, 16], strides = [1, 1]} : vector<5x16xf32> to vector<1x16xf32>
    %201 = vector.broadcast %200 : vector<1x16xf32> to vector<12x16xf32>
    %202 = arith.mulf %199, %201 : vector<12x16xf32>
    %c1_i32_85 = arith.constant 1 : i32
    %203 = tpu.dynamic_rotate %197 by %c1_i32_85 dim 1 : vector<12x16xf32>, i32 -> vector<12x16xf32>
    %204 = vector.extract_strided_slice %59 {offsets = [1, 0], sizes = [1, 16], strides = [1, 1]} : vector<5x16xf32> to vector<1x16xf32>
    %205 = vector.broadcast %204 : vector<1x16xf32> to vector<12x16xf32>
    %206 = arith.mulf %203, %205 : vector<12x16xf32>
    %c15_i32_86 = arith.constant 15 : i32
    %207 = tpu.dynamic_rotate %197 by %c15_i32_86 dim 1 : vector<12x16xf32>, i32 -> vector<12x16xf32>
    %208 = vector.extract_strided_slice %59 {offsets = [3, 0], sizes = [1, 16], strides = [1, 1]} : vector<5x16xf32> to vector<1x16xf32>
    %209 = vector.broadcast %208 : vector<1x16xf32> to vector<12x16xf32>
    %210 = arith.mulf %207, %209 : vector<12x16xf32>
    %c14_i32_87 = arith.constant 14 : i32
    %211 = tpu.dynamic_rotate %197 by %c14_i32_87 dim 1 : vector<12x16xf32>, i32 -> vector<12x16xf32>
    %212 = vector.extract_strided_slice %59 {offsets = [4, 0], sizes = [1, 16], strides = [1, 1]} : vector<5x16xf32> to vector<1x16xf32>
    %213 = vector.broadcast %212 : vector<1x16xf32> to vector<12x16xf32>
    %214 = arith.mulf %211, %213 : vector<12x16xf32>
    %215 = tpu.concatenate %202, %206, %197, %210, %214 in 0 : vector<12x16xf32>, vector<12x16xf32>, vector<12x16xf32>, vector<12x16xf32>, vector<12x16xf32> -> vector<60x16xf32>
    %cst_88 = arith.constant dense<0.000000e+00> : vector<12x16xf32>
    %216 = tpu.matmul %198, %215, %cst_88 {dimension_numbers = #tpu.dot_dimension_numbers<[1], [0], [0], [1], [0, 0, 1, 1], [], []>} : vector<12x60xf32>, vector<60x16xf32>, vector<12x16xf32> -> vector<12x16xf32>
    %c216_89 = arith.constant 216 : index
    %c80_90 = arith.constant 80 : index
    %217 = vector.load %arg2[%c216_89, %c80_90] : memref<392x128xf32, #tpu.memory_space<vmem>>, vector<12x1xf32>
    %218 = vector.broadcast %217 : vector<12x1xf32> to vector<12x16xf32>
    %219 = arith.addf %216, %218 : vector<12x16xf32>
    %c256_91 = arith.constant 256 : index
    %c64_92 = arith.constant 64 : index
    %220 = vector.load %arg2[%c256_91, %c64_92] : memref<392x128xf32, #tpu.memory_space<vmem>>, vector<1x16xf32>
    %c256_93 = arith.constant 256 : index
    %c80_94 = arith.constant 80 : index
    %221 = vector.load %arg2[%c256_93, %c80_94] : memref<392x128xf32, #tpu.memory_space<vmem>>, vector<1x16xf32>
    %cst_95 = arith.constant dense<0.000000e+00> : vector<12xf32>
    %222 = vector.multi_reduction <add>, %219, %cst_95 [1] : vector<12x16xf32> to vector<12xf32>
    %223 = vector.shape_cast %222 : vector<12xf32> to vector<12x1xf32>
    %cst_96 = arith.constant 1.600000e+01 : f32
    %224 = vector.broadcast %cst_96 : f32 to vector<12x1xf32>
    %225 = arith.divf %223, %224 : vector<12x1xf32>
    %226 = vector.broadcast %225 : vector<12x1xf32> to vector<12x16xf32>
    %227 = arith.subf %219, %226 : vector<12x16xf32>
    %228 = arith.mulf %227, %227 : vector<12x16xf32>
    %cst_97 = arith.constant dense<0.000000e+00> : vector<12xf32>
    %229 = vector.multi_reduction <add>, %228, %cst_97 [1] : vector<12x16xf32> to vector<12xf32>
    %230 = vector.shape_cast %229 : vector<12xf32> to vector<12x1xf32>
    %cst_98 = arith.constant 1.600000e+01 : f32
    %231 = vector.broadcast %cst_98 : f32 to vector<12x1xf32>
    %232 = arith.divf %230, %231 : vector<12x1xf32>
    %233 = vector.broadcast %225 : vector<12x1xf32> to vector<12x16xf32>
    %234 = arith.subf %219, %233 : vector<12x16xf32>
    %cst_99 = arith.constant 9.99999974E-6 : f32
    %235 = vector.broadcast %cst_99 : f32 to vector<12x1xf32>
    %236 = arith.addf %232, %235 : vector<12x1xf32>
    %237 = math.rsqrt %236 : vector<12x1xf32>
    %238 = vector.broadcast %237 : vector<12x1xf32> to vector<12x16xf32>
    %239 = arith.mulf %234, %238 : vector<12x16xf32>
    %240 = vector.broadcast %220 : vector<1x16xf32> to vector<12x16xf32>
    %241 = arith.mulf %239, %240 : vector<12x16xf32>
    %242 = vector.broadcast %221 : vector<1x16xf32> to vector<12x16xf32>
    %243 = arith.addf %241, %242 : vector<12x16xf32>
    %cst_100 = arith.constant 2.000000e+01 : f32
    %244 = vector.broadcast %cst_100 : f32 to vector<12x16xf32>
    %245 = arith.minimumf %243, %244 : vector<12x16xf32>
    %246 = math.exp %245 : vector<12x16xf32>
    %cst_101 = arith.constant 2.000000e+00 : f32
    %247 = vector.broadcast %cst_101 : f32 to vector<12x16xf32>
    %248 = arith.addf %246, %247 : vector<12x16xf32>
    %249 = arith.mulf %246, %248 : vector<12x16xf32>
    %cst_102 = arith.constant 2.000000e+00 : f32
    %250 = vector.broadcast %cst_102 : f32 to vector<12x16xf32>
    %251 = arith.addf %249, %250 : vector<12x16xf32>
    %252 = tpu.reciprocal %251 {approx = true} : vector<12x16xf32> -> vector<12x16xf32>
    %253 = arith.mulf %249, %252 : vector<12x16xf32>
    %254 = arith.mulf %243, %253 : vector<12x16xf32>
    %c216_103 = arith.constant 216 : index
    %c96_104 = arith.constant 96 : index
    %255 = vector.load %arg2[%c216_103, %c96_104] : memref<392x128xf32, #tpu.memory_space<vmem>>, vector<12x8xf32>
    %cst_105 = arith.constant dense<0.000000e+00> : vector<12x16xf32>
    %256 = tpu.matmul %255, %0, %cst_105 {dimension_numbers = #tpu.dot_dimension_numbers<[1], [0], [0], [1], [0, 0, 1, 1], [], []>} : vector<12x8xf32>, vector<8x16xf32>, vector<12x16xf32> -> vector<12x16xf32>
    %257 = arith.addf %254, %256 : vector<12x16xf32>
    %c216_106 = arith.constant 216 : index
    %c112_107 = arith.constant 112 : index
    %258 = vector.load %arg2[%c216_106, %c112_107] : memref<392x128xf32, #tpu.memory_space<vmem>>, vector<12x1xf32>
    %259 = vector.broadcast %258 : vector<12x1xf32> to vector<12x16xf32>
    %260 = arith.addf %257, %259 : vector<12x16xf32>
    %c136 = arith.constant 136 : index
    %c64_108 = arith.constant 64 : index
    %261 = vector.load %arg2[%c136, %c64_108] : memref<392x128xf32, #tpu.memory_space<vmem>>, vector<12x36xf32>
    %c240_109 = arith.constant 240 : index
    %c96_110 = arith.constant 96 : index
    %262 = vector.load %arg2[%c240_109, %c96_110] : memref<392x128xf32, #tpu.memory_space<vmem>>, vector<3x16xf32>
    %c1_i32_111 = arith.constant 1 : i32
    %263 = tpu.dynamic_rotate %260 by %c1_i32_111 dim 1 : vector<12x16xf32>, i32 -> vector<12x16xf32>
    %264 = vector.extract_strided_slice %262 {offsets = [0, 0], sizes = [1, 16], strides = [1, 1]} : vector<3x16xf32> to vector<1x16xf32>
    %265 = vector.broadcast %264 : vector<1x16xf32> to vector<12x16xf32>
    %266 = arith.mulf %263, %265 : vector<12x16xf32>
    %c15_i32_112 = arith.constant 15 : i32
    %267 = tpu.dynamic_rotate %260 by %c15_i32_112 dim 1 : vector<12x16xf32>, i32 -> vector<12x16xf32>
    %268 = vector.extract_strided_slice %262 {offsets = [2, 0], sizes = [1, 16], strides = [1, 1]} : vector<3x16xf32> to vector<1x16xf32>
    %269 = vector.broadcast %268 : vector<1x16xf32> to vector<12x16xf32>
    %270 = arith.mulf %267, %269 : vector<12x16xf32>
    %271 = tpu.concatenate %266, %260, %270 in 0 : vector<12x16xf32>, vector<12x16xf32>, vector<12x16xf32> -> vector<36x16xf32>
    %cst_113 = arith.constant dense<0.000000e+00> : vector<12x16xf32>
    %272 = tpu.matmul %261, %271, %cst_113 {dimension_numbers = #tpu.dot_dimension_numbers<[1], [0], [0], [1], [0, 0, 1, 1], [], []>} : vector<12x36xf32>, vector<36x16xf32>, vector<12x16xf32> -> vector<12x16xf32>
    %c200_114 = arith.constant 200 : index
    %c80_115 = arith.constant 80 : index
    %273 = vector.load %arg2[%c200_114, %c80_115] : memref<392x128xf32, #tpu.memory_space<vmem>>, vector<16x8xf32>
    %cst_116 = arith.constant dense<0.000000e+00> : vector<12x8xf32>
    %274 = tpu.matmul %272, %273, %cst_116 {dimension_numbers = #tpu.dot_dimension_numbers<[1], [0], [0], [1], [0, 0, 1, 1], [], []>} : vector<12x16xf32>, vector<16x8xf32>, vector<12x8xf32> -> vector<12x8xf32>
    %c232_117 = arith.constant 232 : index
    %c48_118 = arith.constant 48 : index
    %275 = vector.load %arg2[%c232_117, %c48_118] : memref<392x128xf32, #tpu.memory_space<vmem>>, vector<12x1xf32>
    %276 = vector.broadcast %275 : vector<12x1xf32> to vector<12x8xf32>
    %277 = arith.addf %274, %276 : vector<12x8xf32>
    %c0_119 = arith.constant 0 : index
    %c0_120 = arith.constant 0 : index
    %278 = vector.load %arg3[%c0_119, %c0_120] : memref<12x24xf32, #tpu.memory_space<vmem>>, vector<12x16xf32>
    tpu.vector_store %arg3[%c0_119, %c0_120], %260 {strides = array<i32>} : memref<12x24xf32, #tpu.memory_space<vmem>>, vector<12x16xf32>,
    %c0_121 = arith.constant 0 : index
    %c16_122 = arith.constant 16 : index
    %279 = vector.load %arg3[%c0_121, %c16_122] : memref<12x24xf32, #tpu.memory_space<vmem>>, vector<12x8xf32>
    tpu.vector_store %arg3[%c0_121, %c16_122], %277 {strides = array<i32>} : memref<12x24xf32, #tpu.memory_space<vmem>>, vector<12x8xf32>,
    return
  }
}

</mosaic_0001>

<bundles_post_ra>
// kernel: fwd.1
= control target key start
LH: loop header
LB: loop body
LE: loop exit
PB: predicated region body
PF: predicated region fallthrough
CT: control target
= control target key end

     0   :  { %8 = vsyncpa [#allocation3], 0  ;;  %s4006_s12 = smov [#allocation2]   ;;  %s4835_s0 = inlined_call_operand.vmem [shape: f32[8,16], index: 0, kind: input, shape index: {}]   ;;  %s4836_s1 = inlined_call_operand.vmem [shape: f32[2,64], index: 1, kind: input, shape index: {}]   ;;  %s4837_s2 = inlined_call_operand.hbm [shape: f32[392,128], index: 2, kind: input, shape index: {}]   ;;  %s4838_s3 = inlined_call_operand.vmem [shape: f32[12,24], index: 3, kind: output, shape index: {}]  }
   0x1   :  { %s18_s13 = sshll.u32 %s4006_s12, 4  ;;  %s19_s13 = int_to_ptr.vmem [resolvable:$true] %s18_s13 }
   0x2   :  { %s3992_s14 = scalar_lea.vmem %s19_s13, 6272  ;;  %p3997_p1 = scmp.lt.s32.totalorder %s19_s13, %s19_s13 }
   0x3   :  { %p3993_p0 = scmp.ne.s32.totalorder %s19_s13, %s3992_s14  ;;  %p3998_p2 = scmp.lt.s32.totalorder %s3992_s14, %s3992_s14 }
   0x5   :  { %p3999_p3 = por %p3998_p2, %p3997_p1 }
   0x7   :  { %p4000_p4 = pnand %p3999_p3, %p3993_p0 }
   0x9   :  { %4003 = shalt.err (!%p4000_p4)
}
   0xa   :  { %s4007_s15 = smov 128   ;;  %s4008_s16 = smov 8  }
   0xb   :  { %24 = dma.hbm_to_vmem [thread:$0]  %s4837_s2, 6272, %s19_s13, [#allocation3], %s4007_s15, %s4007_s15, %s4008_s16  }
   0xc   :  { %4004 = dma.done.wait [#allocation3], 6272  }
   0xd   :  { %4005 = vsyncadd [#allocation3], 4294961024  ;;  %v4009_v0 = vmov 0.0   ;;  %vm4010_vm0 = vmmov 0   ;;  %v37_v1 = vld [vmem:[#allocation2 + $0x38] sm:$0xff]  ;;  %v36_v2 = vld [vmem:[#allocation2 + $0x30] sm:$0xff] }
   0xe   :  { %3512 = vmatprep.subr.mxu0 %v4009_v0  ;;  %3528 = vmatprep.mubr.msk.f32.mxu0 %vm4010_vm0, %v4009_v0  ;;  %v35_v3 = vld [vmem:[#allocation2 + $0x28] sm:$0xff]  ;;  %v4066_v4 = vld [vmem:[#allocation2 + $0x140] sm:$0xff]  ;;  %v4068_v5 = vld [vmem:[#allocation2 + $0x130] sm:$0xff]  ;;  %s4011_s2 = smov 112   ;;  %vm43_vm1 = vcmask 523264   ;;  %s4013_s21 = smov 64  }
   0xf   :  { %3531 = vmatprep.subr.mxu1 %v4009_v0  ;;  %3563 = vmatprep.mubr.msk.f32.mxu1 %vm4010_vm0, %v4009_v0  ;;  %v34_v6 = vld [vmem:[#allocation2 + $0x20] sm:$0xff]  ;;  %v4073_v7 = vld [vmem:[#allocation2 + $0x138] sm:$0xff]  ;;  %v4078_v9 = vld [vmem:[#allocation2 + $0x128] sm:$0xff]  ;;  %v4014_v56 = vmov 80   ;;  %s4015_s22 = smov 32   ;;  %vm305_vm2 = vcmask 1041408  }
  0x10   :  { %3513 = vmatpush3.msra.mxu0 %v37_v1  ;;  %193 = vrot.lane.b32.xlu0 %v4066_v4, %s4011_s2  ;;  %v33_v8 = vld [vmem:[#allocation2 + $0x18] sm:$0xff]  ;;  %v32_v10 = vld [vmem:[#allocation2 + $0x10] sm:$0xff]  ;;  %v4085_v11 = vld [vmem:[#allocation2 + $0x120] sm:$0xff]  ;;  %vm302_vm3 = vcmask 15360   ;;  %vm467_vm4 = vcmask 64512   ;;  %s4017_s23 = smov 50  }
  0x11   :  { %3514 = vmatprep.subr.mxu0 %v4009_v0  ;;  %189 = vrot.lane.b32.xlu1 %v4068_v5, %s4011_s2  ;;  %v31_v12 = vld [vmem:[#allocation2 + $0x8] sm:$0xff]  ;;  %v4088_v13 = vld [vmem:[#allocation2 + $0x118] sm:$0xff]  ;;  %v30_v14 = vld [vmem:[#allocation2] sm:$0xff]  ;;  %s4018_s24 = smov 63   ;;  %vm551_vm5 = vcmask 1047680   ;;  %s4019_s27 = smov 49  }
  0x12   :  { %3515 = vmatpush3.msra.mxu0 %v36_v2  ;;  %v29_v15 = vld [vmem:[%s4836_s1] sm:$0x3]  ;;  %v4098_v16 = vld [vmem:[#allocation2 + $0x110] sm:$0xff]  ;;  %v4101_v17 = vld [vmem:[#allocation2 + $0x108] sm:$0xff]  ;;  %s4012_s1 = smov 16   ;;  %3862 = vset.pattern.permute.xlu0 %v4014_v56  ;;  %s4020_s28 = smov 12  }
  0x13   :  { %3516 = vmatprep.subr.mxu0 %v4009_v0  ;;  %v4107_v18 = vld [vmem:[#allocation2 + $0x100] sm:$0xff]  ;;  %v4110_v19 = vld [vmem:[#allocation2 + $0xf8] sm:$0xff]  ;;  %v4118_v20 = vld [vmem:[#allocation2 + $0xf0] sm:$0xff]  ;;  %s4021_s29 = smov 13   ;;  %s4022_s30 = smov 14   ;;  %vm640_vm6 = vcmask 326656  }
  0x14   :  { %3517 = vmatpush3.msra.mxu0 %v35_v3  ;;  %191 = vrot.lane.b32.xlu0 %v4073_v7, %s4011_s2  ;;  %v4120_v21 = vld [vmem:[#allocation2 + $0xe8] sm:$0xff]  ;;  %v4126_v22 = vld [vmem:[#allocation2 + $0xe0] sm:$0xff]  ;;  %v4128_v23 = vld [vmem:[#allocation2 + $0xd8] sm:$0xff]  ;;  %s4023_s4 = smov 62   ;;  %s4024_s5 = smov 127   ;;  %vm725_vm7 = vcmask 125952  }
  0x15   :  { %3518 = vmatprep.subr.mxu0 %v4009_v0  ;;  %187 = vrot.lane.b32.xlu1 %v4078_v9, %s4011_s2  ;;  %v4134_v24 = vld [vmem:[#allocation2 + $0xd0] sm:$0xff]  ;;  %v4136_v25 = vld [vmem:[#allocation2 + $0xc8] sm:$0xff]  ;;  %v3219_v43 = vld [vmem:[#allocation2 + $0x40] ss:$0 sm:$0xff]  ;;  %s4025_s6 = smov 114   ;;  %vm721_vm8 = vcmask 130048  }
  0x16   :  { %3519 = vmatpush3.msra.mxu0 %v34_v6  ;;  %v3221_v30 = vld [vmem:[#allocation2 + $0xf0] ss:$0 sm:$0xff]  ;;  %s4027_s7 = smov 80   ;;  %vm799_vm9 = vcmask 97280   ;;  %vm804_vm10 = vcmask 1043456   ;;  %s4029_s8 = smov 48  }
  0x17   :  { %3520 = vmatprep.subr.mxu0 %v4009_v0  ;;  %s4030_s9 = smov 96   ;;  %vm1913_vm11 = vcmask 261120   ;;  %vm2714_vm12 = vcmask 490496   ;;  %s4032_s15 = smov 33   ;;  %vm3019_vm13 = vcmask 293888   ;;  %vm3210_vm14 = vcmask 195712  }
  0x18   :  { %3521 = vmatpush3.msra.mxu0 %v33_v8  ;;  %185 = vrot.lane.b32.xlu0 %v4085_v11, %s4011_s2  ;;  %s4033_s16 = smov 47   ;;  %s4034_s17 = smov 15   ;;  %vm3212_vm15 = vcmask 191616  }
  0x19   :  { %3522 = vmatprep.subr.mxu0 %v4009_v0  ;;  %183 = vrot.lane.b32.xlu1 %v4088_v13, %s4011_s2  ;;  %s4035_s18 = smov 113  }
  0x1a   :  { %3523 = vmatpush3.msra.mxu0 %v32_v10 }
  0x1b   :  { %3524 = vmatprep.subr.mxu0 %v4009_v0 }
  0x1c   :  { %3525 = vmatpush3.msra.mxu0 %v31_v12  ;;  %181 = vrot.lane.b32.xlu0 %v4098_v16, %s4011_s2 }
  0x1d   :  { %3526 = vmatprep.subr.mxu0 %v4009_v0  ;;  %179 = vrot.lane.b32.xlu1 %v4101_v17, %s4011_s2 }
  0x1e   :  { %3527 = vmatpush3.msra.mxu0 %v30_v14 }
  0x1f   :  { %3529 = vmatmul.mubr.msk.f32.vlgmr.msra.gmra.mxu0 %vm43_vm1, %v29_v15  ;;  %3566 = vmatprep.subr.mxu0 %v4009_v0  ;;  %v4016_v15 = vmov 64  }
  0x20   :  { %3568 = vmatprep.mubr.msk.f32.mxu0 %vm4010_vm0, %v4009_v0  ;;  %177 = vrot.lane.b32.xlu0 %v4107_v18, %s4011_s2 }
  0x21   :  { %175 = vrot.lane.b32.xlu1 %v4110_v19, %s4011_s2 }
  0x24   :  { %173 = vrot.lane.b32.xlu0 %v4118_v20, %s4011_s2 }
  0x25   :  { %171 = vrot.lane.b32.xlu1 %v4120_v21, %s4011_s2 }
  0x28   :  { %169 = vrot.lane.b32.xlu0 %v4126_v22, %s4011_s2 }
  0x29   :  { %167 = vrot.lane.b32.xlu1 %v4128_v23, %s4011_s2 }
  0x2c   :  { %165 = vrot.lane.b32.xlu0 %v4134_v24, %s4011_s2 }
  0x2d   :  { %163 = vrot.lane.b32.xlu1 %v4136_v25, %s4011_s2 }
  0x30   :  { %212 = vrot.lane.b32.xlu0 %v3221_v30, %s4012_s1 }
  0x31   :  { %300 = vrot.lane.b32.xlu1 %v4120_v21, %s4013_s21 }
  0x34   :  { %297 = vperm.xlu0 %3862, %v4120_v21  }
  0x35   :  { %388 = vrot.lane.b32.xlu1 %v4120_v21, %s4012_s1 }
  0x38   :  { %3863 = vset.pattern.permute.xlu0 %v4016_v15 }
  0x39   :  { %465 = vrot.lane.b32.xlu1 %v4120_v21, %s4015_s22  ;;  %543 = vperm.xlu0 %3863, %v4118_v20  }
  0x82   :  { %v194_v26 = vpop.permute.xlu0 %193 }
  0x83   :  { %3532 = vmatpush3.msra.mxu1 %v194_v26  ;;  %v190_v27 = vpop.permute.xlu1 %189 }
  0x84   :  { %3533 = vmatprep.subr.mxu1 %v4009_v0 }
  0x86   :  { %v192_v28 = vpop.permute.xlu0 %191 }
  0x87   :  { %3534 = vmatpush3.msra.mxu1 %v192_v28  ;;  %v188_v29 = vpop.permute.xlu1 %187 }
  0x88   :  { %3535 = vmatprep.subr.mxu1 %v4009_v0 }
  0x89   :  { %3536 = vmatpush3.msra.mxu1 %v190_v27 }
  0x8a   :  { %3537 = vmatprep.subr.mxu1 %v4009_v0  ;;  %v186_v31 = vpop.permute.xlu0 %185 }
  0x8b   :  { %3538 = vmatpush3.msra.mxu1 %v188_v29  ;;  %v184_v32 = vpop.permute.xlu1 %183 }
  0x8c   :  { %3539 = vmatprep.subr.mxu1 %v4009_v0 }
  0x8d   :  { %3540 = vmatpush3.msra.mxu1 %v186_v31 }
  0x8e   :  { %3541 = vmatprep.subr.mxu1 %v4009_v0  ;;  %v182_v33 = vpop.permute.xlu0 %181 }
  0x8f   :  { %3542 = vmatpush3.msra.mxu1 %v184_v32  ;;  %v180_v34 = vpop.permute.xlu1 %179 }
  0x90   :  { %3543 = vmatprep.subr.mxu1 %v4009_v0 }
  0x91   :  { %3544 = vmatpush3.msra.mxu1 %v182_v33 }
  0x92   :  { %3545 = vmatprep.subr.mxu1 %v4009_v0  ;;  %v178_v35 = vpop.permute.xlu0 %177 }
  0x93   :  { %3546 = vmatpush3.msra.mxu1 %v180_v34  ;;  %v176_v36 = vpop.permute.xlu1 %175 }
  0x94   :  { %3547 = vmatprep.subr.mxu1 %v4009_v0 }
  0x95   :  { %3548 = vmatpush3.msra.mxu1 %v178_v35 }
  0x96   :  { %3549 = vmatprep.subr.mxu1 %v4009_v0  ;;  %v174_v37 = vpop.permute.xlu0 %173 }
  0x97   :  { %3550 = vmatpush3.msra.mxu1 %v176_v36  ;;  %v172_v38 = vpop.permute.xlu1 %171 }
  0x98   :  { %3551 = vmatprep.subr.mxu1 %v4009_v0 }
  0x99   :  { %3552 = vmatpush3.msra.mxu1 %v174_v37 }
  0x9a   :  { %3553 = vmatprep.subr.mxu1 %v4009_v0  ;;  %v170_v39 = vpop.permute.xlu0 %169 }
  0x9b   :  { %3554 = vmatpush3.msra.mxu1 %v172_v38  ;;  %v168_v40 = vpop.permute.xlu1 %167 }
  0x9c   :  { %3555 = vmatprep.subr.mxu1 %v4009_v0 }
  0x9d   :  { %3556 = vmatpush3.msra.mxu1 %v170_v39 }
  0x9e   :  { %3557 = vmatprep.subr.mxu1 %v4009_v0  ;;  %v166_v41 = vpop.permute.xlu0 %165 }
  0x9f   :  { %3558 = vmatpush3.msra.mxu1 %v168_v40  ;;  %v164_v42 = vpop.permute.xlu1 %163 }
  0xa0   :  { %3559 = vmatprep.subr.mxu1 %v4009_v0 }
  0xa1   :  { %3560 = vmatpush3.msra.mxu1 %v166_v41  ;;  %v558_v41 = vlaneseq }
  0xa2   :  { %3561 = vmatprep.subr.mxu1 %v4009_v0  ;;  %v213_v57 = vpop.permute.xlu0 %212 }
  0xa3   :  { %3562 = vmatpush3.msra.mxu1 %v164_v42  ;;  %v301_v12 = vpop.permute.xlu1 %300  ;;  %v4174_v42 = vshrl.u32 %v558_v41, 7 }
  0xa7   :  { %v389_v14 = vpop.permute.xlu1 %388 }
  0xaf   :  { %v298_v26 = vpop.permute.xlu0 %297 }
  0xdf   :  { %v113_v44 = vpop.f32.mrf.mxu0 }
  0xe0   :  { %v114_v45 = vadd.f32 %v3219_v43, %v113_v44  ;;  %v548_v43 = vld [vmem:[#allocation2 + $0xf0] sm:$0x1f]  ;;  %v587_v44 = vsub.s32 4, %v4174_v42 }
  0xe1   :  { %v3530_v46 = vpop.f32.mrf.mxu0 }
  0xe2   :  { %v117_v47 = vmin.f32 %v114_v45, 20.0  ;;  %v569_v46 = vsub.s32 1, %v4174_v42 }
  0xe4   :  { %v118_v48 = vmul.f32 1.442695, %v117_v47  ;;  %v570_v47 = vrot.slane %v548_v43, %v569_v46 }
  0xe6   :  { %3873 = vpow2.f32 %v118_v48 }
  0xf3   :  { %v3874_v49 = vpop.eup %3873 }
  0xf4   :  { %v120_v50 = vadd.f32 2.0, %v3874_v49 }
  0xf6   :  { %v121_v51 = vmul.f32 %v3874_v49, %v120_v50  ;;  %v544_v49 = vpop.permute.xlu0 %543 }
  0xf8   :  { %v122_v52 = vadd.f32 2.0, %v121_v51 }
  0xfa   :  { %3875 = vrcp.f32 %v122_v52 }
 0x107   :  { %v3876_v53 = vpop.eup %3875 }
 0x108   :  { %v124_v54 = vmul.f32 %v3876_v53, %v121_v51  ;;  %v28_v51 = vld [vmem:[%s4835_s0] sm:$0xff] }
 0x10a   :  { %v125_v55 = vmul.f32 %v124_v54, %v114_v45  ;;  %v588_v45 = vrot.slane %v548_v43, %v587_v44 }
 0x10c   :  { %3564 = vmatmul.mubr.f32.vlgmr.msra.gmra.mxu1 %v125_v55  ;;  %590 = vrot.lane.b32.xlu0 %v588_v45, %s4017_s23  ;;  %v578_v55 = vsub.s32 3, %v4174_v42 }
 0x110   :  { %572 = vrot.lane.b32.xlu0 %v570_v47, %s4018_s24 }
 0x1cc   :  { %v281_v58 = vpop.f32.mrf.mxu1 }
 0x1cd   :  { %v282_v59 = vadd.f32 %v281_v58, %v213_v57 }
 0x1ce   :  { %v3565_v60 = vpop.f32.mrf.mxu1 }
 0x1cf   :  { %v286_v61 = vmin.f32 %v282_v59, 20.0 }
 0x1d1   :  { %v287_v62 = vmul.f32 1.442695, %v286_v61  ;;  %v4185_v61 = vpop.permute.xlu0 %590 }
 0x1d3   :  { %3877 = vpow2.f32 %v287_v62 }
 0x1e0   :  { %v3878_v63 = vpop.eup %3877 }
 0x1e1   :  { %v289_v1 = vadd.f32 2.0, %v3878_v63 }
 0x1e3   :  { %v290_v2 = vmul.f32 %v3878_v63, %v289_v1  ;;  %v560_v1 = vsub.s32 0, %v4174_v42 }
 0x1e5   :  { %v291_v3 = vadd.f32 2.0, %v290_v2 }
 0x1e7   :  { %3879 = vrcp.f32 %v291_v3 }
 0x1f4   :  { %v3880_v6 = vpop.eup %3879 }
 0x1f5   :  { %v293_v8 = vmul.f32 %v3880_v6, %v290_v2  ;;  %v4194_v6 = vpop.permute.xlu0 %572 }
 0x1f7   :  { %v294_v10 = vmul.f32 %v293_v8, %v282_v59  ;;  %v561_v8 = vrot.slane %v548_v43, %v560_v1 }
 0x1f9   :  { %3567 = vmatpush3.msk.msra.mxu0 %vm305_vm2, %v294_v10 }
 0x1fa   :  { %3569 = vmatmul.mubr.msk.f32.vlgmr.msra.gmra.mxu0 %vm302_vm3, %v301_v12  ;;  %3571 = vmatprep.subr.mxu0 %v4009_v0 }
 0x1fb   :  { %3572 = vmatpush3.msk.msra.mxu0 %vm305_vm2, %v282_v59  ;;  %3573 = vmatprep.mubr.msk.f32.mxu0 %vm4010_vm0, %v4009_v0  ;;  %v579_v59 = vrot.slane %v548_v43, %v578_v55 }
 0x1fc   :  { %3576 = vmatprep.subr.mxu0 %v4009_v0 }
 0x1fe   :  { %3574 = vmatmul.mubr.msk.f32.vlgmr.msra.gmra.mxu0 %vm302_vm3, %v389_v14  ;;  %v4026_v14 = vmov 96  }
 0x1ff   :  { %3578 = vmatprep.mubr.msk.f32.mxu0 %vm4010_vm0, %v4009_v0  ;;  %v466_v0 = vpop.permute.xlu1 %465  ;;  %3864 = vset.pattern.permute.xlu1 %v4026_v14 }
 0x200   :  { %3865 = vset.pattern.permute.xlu0 %v4026_v14 }
 0x2ba   :  { %v375_v27 = vpop.f32.mrf.mxu0 }
 0x2bb   :  { %v376_v28 = vadd.f32 %v375_v27, %v298_v26 }
 0x2bc   :  { %v3570_v29 = vpop.f32.mrf.mxu0 }
 0x2bd   :  { %v379_v30 = vmin.f32 %v376_v28, 20.0 }
 0x2be   :  { %v461_v39 = vpop.f32.mrf.mxu0 }
 0x2bf   :  { %v380_v31 = vmul.f32 1.442695, %v379_v30  ;;  %v4210_v30 = vld [vmem:[#allocation2 + $0x58] sm:$0xff] }
 0x2c0   :  { %v3575_v40 = vpop.f32.mrf.mxu0 }
 0x2c1   :  { %3881 = vpow2.f32 %v380_v31  ;;  %v550_v31 = vld [vmem:[#allocation2 + $0x60] sm:$0xf] }
 0x2ce   :  { %v3882_v32 = vpop.eup %3881 }
 0x2cf   :  { %v382_v33 = vadd.f32 2.0, %v3882_v32 }
 0x2d1   :  { %v383_v34 = vmul.f32 %v3882_v32, %v382_v33  ;;  %v607_v32 = vld [vmem:[#allocation2 + $0xd0] sm:$0xf] }
 0x2d3   :  { %v384_v35 = vadd.f32 2.0, %v383_v34 }
 0x2d5   :  { %3883 = vrcp.f32 %v384_v35 }
 0x2e2   :  { %v3884_v36 = vpop.eup %3883 }
 0x2e3   :  { %v386_v37 = vmul.f32 %v3884_v36, %v383_v34 }
 0x2e5   :  { %v387_v38 = vmul.f32 %v386_v37, %v376_v28 }
 0x2e7   :  { %3577 = vmatpush3.msra.mxu0 %v387_v38 }
 0x2e8   :  { %3579 = vmatmul.mubr.msk.f32.vlgmr.msra.gmra.mxu0 %vm467_vm4, %v466_v0 }
 0x3a8   :  { %v536_v48 = vpop.f32.mrf.mxu0 }
 0x3a9   :  { %v537_v50 = vadd.f32 %v536_v48, %v461_v39 }
 0x3aa   :  { %v3580_v52 = vpop.f32.mrf.mxu0 }
 0x3ab   :  { %v546_v53 = vadd.f32 %v544_v49, %v537_v50 }
 0x3ad   :  { %v547_v54 = vadd.f32 %v546_v53, %v28_v51 }
 0x3af   :  { %552 = vrot.lane.b32.xlu1 %v547_v54, %s4012_s1 }
 0x421   :  { %v553_v57 = vpop.permute.xlu1 %552 }
 0x422   :  { %v554_v58 = vsel %vm551_vm5, %v553_v57, %v547_v54 }
 0x423   :  { %555 = vrot.lane.b32.xlu1 %v554_v58, %s4012_s1 }
 0x427   :  { %581 = vrot.lane.b32.xlu1 %v579_v59, %s4019_s27  ;;  %v4220_v59 = vld [vmem:[#allocation2 + $0xf8] ss:$0 sm:$0xff] }
 0x495   :  { %v556_v60 = vpop.permute.xlu1 %555 }
 0x496   :  { %v557_v62 = vsel %vm551_vm5, %v556_v60, %v547_v54  ;;  %v784_v60 = vld [vmem:[#allocation2 + $0xe0] sm:$0xf] }
 0x497   :  { %v593_v63 = vmul.f32 %v4185_v61, %v557_v62  ;;  %v575_v10 = vmul.f32 %v4194_v6, %v557_v62 }
 0x499   :  { %604 = vrot.lane.b32.xlu1 %v593_v63, %s4020_s28  ;;  %v4191_v2 = vpop.permute.xlu1 %581 }
 0x49a   :  { %v584_v3 = vmul.f32 %v4191_v2, %v557_v62 }
 0x49c   :  { %601 = vrot.lane.b32.xlu0 %v584_v3, %s4021_s29 }
 0x49d   :  { %598 = vrot.lane.b32.xlu1 %v547_v54, %s4022_s30 }
 0x4a0   :  { %563 = vrot.lane.b32.xlu0 %v561_v8, %s4023_s4 }
 0x4a1   :  { %595 = vrot.lane.b32.xlu1 %v575_v10, %s4024_s5 }
 0x50b   :  { %v605_v12 = vpop.permute.xlu1 %604 }
 0x50c   :  { %633 = vrot.lane.b32.xlu0 %v605_v12, %s4025_s6 }
 0x50e   :  { %v602_v15 = vpop.permute.xlu0 %601 }
 0x50f   :  { %631 = vrot.lane.b32.xlu1 %v602_v15, %s4025_s6  ;;  %v599_v26 = vpop.permute.xlu1 %598 }
 0x510   :  { %629 = vrot.lane.b32.xlu0 %v599_v26, %s4025_s6 }
 0x512   :  { %v4205_v27 = vpop.permute.xlu0 %563 }
 0x513   :  { %v596_v28 = vpop.permute.xlu1 %595  ;;  %v566_v29 = vmul.f32 %v4205_v27, %v557_v62  ;;  %v4028_v62 = vmov 48  }
 0x514   :  { %627 = vrot.lane.b32.xlu1 %v596_v28, %s4025_s6 }
 0x515   :  { %625 = vrot.lane.b32.xlu0 %v566_v29, %s4025_s6 }
 0x518   :  { %620 = vrot.lane.b32.xlu1 %v4210_v30, %s4013_s21 }
 0x519   :  { %622 = vrot.lane.b32.xlu0 %v550_v31, %s4013_s21 }
 0x51c   :  { %615 = vperm.xlu1 %3864, %v607_v32  }
 0x51d   :  { %610 = vperm.xlu0 %3865, %v4136_v25  }
 0x520   :  { %3867 = vset.pattern.permute.xlu1 %v4028_v62 }
 0x521   :  { %3866 = vset.pattern.permute.xlu0 %v4028_v62 }
 0x57e   :  { %v634_v33 = vpop.permute.xlu0 %633 }
 0x57f   :  { %3581 = vmatprep.subr.mxu0 %v634_v33 }
 0x580   :  { %3582 = vmatpush3.msra.mxu0 %v634_v33 }
 0x581   :  { %v632_v34 = vpop.permute.xlu1 %631 }
 0x582   :  { %v630_v35 = vpop.permute.xlu0 %629  ;;  %3583 = vmatprep.subr.mxu0 %v632_v34 }
 0x583   :  { %3584 = vmatpush3.msra.mxu0 %v632_v34 }
 0x584   :  { %3585 = vmatprep.subr.mxu0 %v630_v35 }
 0x585   :  { %3586 = vmatpush3.msra.mxu0 %v630_v35 }
 0x586   :  { %v628_v36 = vpop.permute.xlu1 %627 }
 0x587   :  { %v626_v37 = vpop.permute.xlu0 %625  ;;  %3587 = vmatprep.subr.mxu0 %v628_v36 }
 0x588   :  { %3588 = vmatpush3.msra.mxu0 %v628_v36 }
 0x589   :  { %3589 = vmatprep.subr.mxu0 %v626_v37 }
 0x58a   :  { %3590 = vmatpush3.msra.mxu0 %v626_v37  ;;  %v621_v38 = vpop.permute.xlu1 %620 }
 0x58b   :  { %v623_v0 = vpop.permute.xlu0 %622  ;;  %3591 = vmatprep.mubr.msk.f32.mxu0 %vm640_vm6, %v621_v38 }
 0x58c   :  { %3592 = vmatmul.mubr.msk.f32.vlgmr.msra.gmra.mxu0 %vm640_vm6, %v623_v0 }
 0x597   :  { %v616_v39 = vpop.permute.xlu1 %615 }
 0x598   :  { %v611_v41 = vpop.permute.xlu0 %610 }
 0x64c   :  { %v3593_v40 = vpop.f32.mrf.mxu0 }
 0x64d   :  { %v717_v43 = vadd.f32 %v3593_v40, %v616_v39 }
 0x64e   :  { %v711_v44 = vpop.f32.mrf.mxu0 }
 0x64f   :  { %v712_v45 = vadd.f32 %v711_v44, %v611_v41  ;;  %v726_v46 = vsel %vm725_vm7, %v717_v43, 0.0 }
 0x650   :  { %727 = vadd.xlane.f32.xlu1 %v726_v46 }
 0x651   :  { %v722_v47 = vsel %vm721_vm8, %v712_v45, 0.0 }
 0x652   :  { %723 = vadd.xlane.f32.xlu0 %v722_v47 }
 0x6d9   :  { %v728_v48 = vpop.xlane.xlu1 %727 }
 0x6da   :  { %v731_v49 = vmul.f32 0.0625, %v728_v48 }
 0x6db   :  { %v724_v50 = vpop.xlane.xlu0 %723 }
 0x6dc   :  { %v733_v51 = vsub.f32 %v717_v43, %v731_v49  ;;  %v730_v52 = vmul.f32 0.0625, %v724_v50 }
 0x6de   :  { %v732_v53 = vsub.f32 %v712_v45, %v730_v52  ;;  %v735_v54 = vmul.f32 %v733_v51, %v733_v51 }
 0x6e0   :  { %v739_v55 = vsel %vm725_vm7, %v735_v54, 0.0  ;;  %v734_v57 = vmul.f32 %v732_v53, %v732_v53 }
 0x6e1   :  { %740 = vadd.xlane.f32.xlu1 %v739_v55 }
 0x6e2   :  { %v736_v58 = vsel %vm721_vm8, %v734_v57, 0.0 }
 0x6e3   :  { %737 = vadd.xlane.f32.xlu0 %v736_v58 }
 0x6f2   :  { %755 = vrot.lane.b32.xlu1 %v4220_v59, %s4027_s7 }
 0x6f6   :  { %795 = vrot.lane.b32.xlu1 %v4136_v25, %s4012_s1 }
 0x6f9   :  { %760 = vrot.lane.b32.xlu0 %v4220_v59, %s4013_s21 }
 0x6fa   :  { %797 = vrot.lane.b32.xlu1 %v607_v32, %s4012_s1 }
 0x6fd   :  { %792 = vperm.xlu0 %3866, %v784_v60  }
 0x6fe   :  { %787 = vperm.xlu1 %3867, %v4128_v23  }
 0x701   :  { %3869 = vset.pattern.permute.xlu0 %v4014_v56 }
 0x702   :  { %3868 = vset.pattern.permute.xlu1 %v4014_v56 }
 0x76a   :  { %v741_v63 = vpop.xlane.xlu1 %740 }
 0x76b   :  { %v743_v3 = vmul.f32 0.0625, %v741_v63 }
 0x76c   :  { %v738_v8 = vpop.xlane.xlu0 %737 }
 0x76d   :  { %v745_v10 = vadd.f32 1e-05, %v743_v3  ;;  %v742_v12 = vmul.f32 0.0625, %v738_v8 }
 0x76e   :  { %v756_v14 = vpop.permute.xlu1 %755 }
 0x76f   :  { %3885 = vrsqrt.f32 %v745_v10  ;;  %v744_v15 = vadd.f32 1e-05, %v742_v12 }
 0x770   :  { %v761_v32 = vpop.permute.xlu0 %760 }
 0x771   :  { %3887 = vrsqrt.f32 %v744_v15 }
 0x772   :  { %v796_v26 = vpop.permute.xlu1 %795 }
 0x773   :  { %3598 = vmatprep.mubr.msk.f32.mxu1 %vm799_vm9, %v796_v26 }
 0x776   :  { %v798_v55 = vpop.permute.xlu1 %797 }
 0x778   :  { %v793_v57 = vpop.permute.xlu0 %792 }
 0x77a   :  { %v788_v60 = vpop.permute.xlu1 %787 }
 0x77c   :  { %v3886_v28 = vpop.eup %3885 }
 0x77d   :  { %v749_v29 = vmul.f32 %v3886_v28, %v733_v51 }
 0x77e   :  { %v3888_v31 = vpop.eup %3887 }
 0x77f   :  { %v748_v33 = vmul.f32 %v3888_v31, %v732_v53  ;;  %v759_v34 = vmul.f32 %v756_v14, %v749_v29 }
 0x781   :  { %v758_v56 = vmul.f32 %v756_v14, %v748_v33  ;;  %v764_v35 = vadd.f32 %v761_v32, %v759_v34 }
 0x783   :  { %v763_v36 = vadd.f32 %v761_v32, %v758_v56  ;;  %v766_v37 = vmin.f32 %v764_v35, 20.0 }
 0x785   :  { %v765_v38 = vmin.f32 %v763_v36, 20.0  ;;  %v769_v0 = vmul.f32 1.442695, %v766_v37 }
 0x787   :  { %v767_v39 = vmul.f32 1.442695, %v765_v38  ;;  %3889 = vpow2.f32 %v769_v0 }
 0x789   :  { %3891 = vpow2.f32 %v767_v39 }
 0x794   :  { %v3890_v40 = vpop.eup %3889 }
 0x795   :  { %v772_v41 = vadd.f32 2.0, %v3890_v40 }
 0x796   :  { %v3892_v43 = vpop.eup %3891 }
 0x797   :  { %v774_v44 = vmul.f32 %v3890_v40, %v772_v41  ;;  %v771_v45 = vadd.f32 2.0, %v3892_v43 }
 0x799   :  { %v776_v46 = vadd.f32 2.0, %v774_v44  ;;  %v773_v47 = vmul.f32 %v3892_v43, %v771_v45 }
 0x79b   :  { %3893 = vrcp.f32 %v776_v46  ;;  %v775_v48 = vadd.f32 2.0, %v773_v47 }
 0x79d   :  { %3895 = vrcp.f32 %v775_v48 }
 0x7a8   :  { %v3894_v49 = vpop.eup %3893 }
 0x7a9   :  { %v780_v50 = vmul.f32 %v3894_v49, %v774_v44 }
 0x7aa   :  { %v3896_v51 = vpop.eup %3895 }
 0x7ab   :  { %v782_v52 = vmul.f32 %v780_v50, %v764_v35  ;;  %v779_v53 = vmul.f32 %v3896_v51, %v773_v47  ;;  %v3274_v35 = vld [vmem:[#allocation2 + $0x100] ss:$0 sm:$0xff] }
 0x7ad   :  { %3594 = vmatprep.subr.msk.mxu1 %vm804_vm10, %v782_v52  ;;  %v781_v54 = vmul.f32 %v779_v53, %v763_v36 }
 0x7ae   :  { %3595 = vmatpush3.msk.msra.mxu1 %vm804_vm10, %v782_v52 }
 0x7af   :  { %3596 = vmatprep.subr.mxu1 %v781_v54 }
 0x7b0   :  { %3597 = vmatpush3.msra.mxu1 %v781_v54 }
 0x7b1   :  { %3599 = vmatmul.mubr.msk.f32.vlgmr.msra.gmra.mxu1 %vm799_vm9, %v798_v55 }
 0x7b2   :  { %3605 = vmatprep.mubr.msk.f32.mxu1 %vm799_vm9, %v4136_v25 }
 0x871   :  { %v3600_v58 = vpop.f32.mrf.mxu1 }
 0x872   :  { %v4240_v63 = vadd.f32 %v3600_v58, %v793_v57 }
 0x873   :  { %v874_v3 = vpop.f32.mrf.mxu1 }
 0x874   :  { %v4242_v8 = vadd.f32 %v874_v3, %v788_v60  ;;  %v886_v10 = vsel %vm725_vm7, %v4240_v63, 0.0 }
 0x875   :  { %887 = vadd.xlane.f32.xlu1 %v886_v10 }
 0x876   :  { %v883_v12 = vsel %vm721_vm8, %v4242_v8, 0.0 }
 0x877   :  { %884 = vadd.xlane.f32.xlu0 %v883_v12 }
 0x8fe   :  { %v888_v14 = vpop.xlane.xlu1 %887 }
 0x8ff   :  { %v890_v15 = vmul.f32 0.0625, %v888_v14 }
 0x900   :  { %v885_v26 = vpop.xlane.xlu0 %884 }
 0x901   :  { %v892_v28 = vsub.f32 %v4240_v63, %v890_v15  ;;  %v889_v29 = vmul.f32 0.0625, %v885_v26 }
 0x903   :  { %v891_v31 = vsub.f32 %v4242_v8, %v889_v29  ;;  %v894_v32 = vmul.f32 %v892_v28, %v892_v28 }
 0x905   :  { %v898_v33 = vsel %vm725_vm7, %v894_v32, 0.0  ;;  %v893_v34 = vmul.f32 %v891_v31, %v891_v31 }
 0x906   :  { %899 = vadd.xlane.f32.xlu0 %v898_v33 }
 0x907   :  { %v895_v56 = vsel %vm721_vm8, %v893_v34, 0.0 }
 0x908   :  { %896 = vadd.xlane.f32.xlu1 %v895_v56 }
 0x919   :  { %914 = vrot.lane.b32.xlu1 %v4220_v59, %s4015_s22 }
 0x91c   :  { %909 = vrot.lane.b32.xlu0 %v4220_v59, %s4029_s8 }
 0x91d   :  { %1209 = vrot.lane.b32.xlu1 %v4134_v24, %s4027_s7 }
 0x920   :  { %1207 = vrot.lane.b32.xlu0 %v4136_v25, %s4027_s7 }
 0x921   :  { %1480 = vrot.lane.b32.xlu1 %v4134_v24, %s4013_s21 }
 0x924   :  { %1478 = vrot.lane.b32.xlu0 %v4136_v25, %s4013_s21 }
 0x925   :  { %1485 = vrot.lane.b32.xlu1 %v3274_v35, %s4027_s7 }
 0x928   :  { %1213 = vrot.lane.b32.xlu0 %v4220_v59, %s4012_s1  ;;  %v4303_v59 = vld [vmem:[#allocation2 + $0x50] sm:$0xff] }
 0x929   :  { %1409 = vrot.lane.b32.xlu1 %v4136_v25, %s4030_s9  ;;  %v4297_v25 = vld [vmem:[#allocation2 + $0x48] sm:$0xff] }
 0x92c   :  { %1411 = vrot.lane.b32.xlu0 %v4134_v24, %s4030_s9 }
 0x92d   :  { %1413 = vrot.lane.b32.xlu1 %v4128_v23, %s4030_s9 }
 0x930   :  { %1415 = vrot.lane.b32.xlu0 %v4126_v22, %s4030_s9 }
 0x931   :  { %1417 = vrot.lane.b32.xlu1 %v4120_v21, %s4030_s9 }
 0x934   :  { %1419 = vrot.lane.b32.xlu0 %v4118_v20, %s4030_s9 }
 0x935   :  { %1421 = vrot.lane.b32.xlu1 %v4110_v19, %s4030_s9 }
 0x938   :  { %1423 = vrot.lane.b32.xlu0 %v4107_v18, %s4030_s9 }
 0x939   :  { %1425 = vrot.lane.b32.xlu1 %v4101_v17, %s4030_s9 }
 0x93c   :  { %1427 = vrot.lane.b32.xlu0 %v4098_v16, %s4030_s9 }
 0x93d   :  { %1429 = vrot.lane.b32.xlu1 %v4088_v13, %s4030_s9 }
 0x940   :  { %1431 = vrot.lane.b32.xlu0 %v4085_v11, %s4030_s9 }
 0x941   :  { %1433 = vrot.lane.b32.xlu1 %v4078_v9, %s4030_s9 }
 0x944   :  { %1435 = vrot.lane.b32.xlu0 %v4068_v5, %s4030_s9 }
 0x945   :  { %1437 = vrot.lane.b32.xlu1 %v4073_v7, %s4030_s9 }
 0x948   :  { %1439 = vrot.lane.b32.xlu0 %v4066_v4, %s4030_s9 }
 0x949   :  { %1591 = vrot.lane.b32.xlu1 %v4303_v59, %s4013_s21 }
 0x94c   :  { %1589 = vrot.lane.b32.xlu0 %v4297_v25, %s4013_s21 }
 0x98f   :  { %v900_v36 = vpop.xlane.xlu0 %899 }
 0x990   :  { %v902_v37 = vmul.f32 0.0625, %v900_v36 }
 0x991   :  { %v897_v38 = vpop.xlane.xlu1 %896 }
 0x992   :  { %v904_v0 = vadd.f32 1e-05, %v902_v37  ;;  %v901_v39 = vmul.f32 0.0625, %v897_v38 }
 0x993   :  { %v910_v41 = vpop.permute.xlu0 %909 }
 0x994   :  { %3897 = vrsqrt.f32 %v904_v0  ;;  %v903_v40 = vadd.f32 1e-05, %v901_v39 }
 0x995   :  { %v915_v43 = vpop.permute.xlu1 %914 }
 0x996   :  { %3899 = vrsqrt.f32 %v903_v40 }
 0x997   :  { %v1208_v45 = vpop.permute.xlu0 %1207 }
 0x999   :  { %v1210_v44 = vpop.permute.xlu1 %1209 }
 0x99a   :  { %3641 = vmatprep.subr.mxu0 %v1210_v44 }
 0x99b   :  { %3642 = vmatpush3.msra.mxu0 %v1210_v44 }
 0x99c   :  { %3643 = vmatprep.subr.mxu0 %v1208_v45 }
 0x99d   :  { %3644 = vmatpush3.msra.mxu0 %v1208_v45 }
 0x9a1   :  { %v3898_v46 = vpop.eup %3897 }
 0x9a2   :  { %v908_v47 = vmul.f32 %v3898_v46, %v892_v28 }
 0x9a3   :  { %v3900_v48 = vpop.eup %3899 }
 0x9a4   :  { %v907_v49 = vmul.f32 %v3900_v48, %v891_v31  ;;  %v913_v50 = vmul.f32 %v910_v41, %v908_v47 }
 0x9a6   :  { %v912_v51 = vmul.f32 %v910_v41, %v907_v49  ;;  %v918_v52 = vadd.f32 %v915_v43, %v913_v50 }
 0x9a8   :  { %v917_v53 = vadd.f32 %v915_v43, %v912_v51  ;;  %3601 = vmatprep.subr.msk.mxu1 %vm804_vm10, %v918_v52 }
 0x9a9   :  { %3602 = vmatpush3.msk.msra.mxu1 %vm804_vm10, %v918_v52 }
 0x9aa   :  { %3603 = vmatprep.subr.mxu1 %v917_v53 }
 0x9ab   :  { %3604 = vmatpush3.msra.mxu1 %v917_v53 }
 0x9ac   :  { %3606 = vmatmul.mubr.msk.f32.vlgmr.msra.gmra.mxu1 %vm799_vm9, %v4134_v24  ;;  %v1479_v24 = vpop.permute.xlu0 %1478 }
 0x9ad   :  { %3608 = vmatprep.mubr.msk.f32.mxu1 %vm799_vm9, %v4128_v23 }
 0x9b0   :  { %3609 = vmatmul.mubr.msk.f32.gmra.mxu1 %vm799_vm9, %v4126_v22  ;;  %v4357_v54 = vpop.permute.xlu0 %1213 }
 0x9b1   :  { %3611 = vmatprep.mubr.msk.f32.mxu1 %vm799_vm9, %v4120_v21 }
 0x9b4   :  { %3612 = vmatmul.mubr.msk.f32.gmra.mxu1 %vm799_vm9, %v4118_v20  ;;  %v4361_v57 = vpop.permute.xlu0 %1411 }
 0x9b5   :  { %3614 = vmatprep.mubr.msk.f32.mxu1 %vm799_vm9, %v4110_v19 }
 0x9b8   :  { %3615 = vmatmul.mubr.msk.f32.gmra.mxu1 %vm799_vm9, %v4107_v18  ;;  %v935_v18 = vld [vmem:[#allocation2 + $0x148] sm:$0xff]  ;;  %v4365_v60 = vpop.permute.xlu0 %1415 }
 0x9b9   :  { %3617 = vmatprep.mubr.msk.f32.mxu1 %vm799_vm9, %v4101_v17  ;;  %v1481_v17 = vpop.permute.xlu1 %1480 }
 0x9ba   :  { %3669 = vmatprep.subr.mxu0 %v1481_v17 }
 0x9bc   :  { %3618 = vmatmul.mubr.msk.f32.gmra.mxu1 %vm799_vm9, %v4098_v16  ;;  %v936_v16 = vld [vmem:[#allocation2 + $0x150] sm:$0xff]  ;;  %v4369_v10 = vpop.permute.xlu0 %1419 }
 0x9bd   :  { %3620 = vmatprep.mubr.msk.f32.mxu1 %vm799_vm9, %v4088_v13  ;;  %v937_v13 = vld [vmem:[#allocation2 + $0x158] sm:$0xff]  ;;  %v4347_v19 = vpop.permute.xlu1 %1485 }
 0x9c0   :  { %3621 = vmatmul.mubr.msk.f32.gmra.mxu1 %vm799_vm9, %v4085_v11  ;;  %v938_v11 = vld [vmem:[#allocation2 + $0x160] sm:$0xff]  ;;  %v4375_v28 = vpop.permute.xlu0 %1423 }
 0x9c1   :  { %3623 = vmatprep.mubr.msk.f32.mxu1 %vm799_vm9, %v4078_v9  ;;  %v939_v9 = vld [vmem:[#allocation2 + $0x168] sm:$0xff]  ;;  %v4349_v20 = vpop.permute.xlu1 %1409 }
 0x9c4   :  { %3624 = vmatmul.mubr.msk.f32.gmra.mxu1 %vm799_vm9, %v4068_v5  ;;  %v940_v5 = vld [vmem:[#allocation2 + $0x170] sm:$0xff]  ;;  %v4380_v34 = vpop.permute.xlu0 %1427 }
 0x9c5   :  { %3626 = vmatprep.mubr.msk.f32.mxu1 %vm799_vm9, %v4073_v7  ;;  %v941_v7 = vld [vmem:[#allocation2 + $0x178] sm:$0xff]  ;;  %v4351_v21 = vpop.permute.xlu1 %1413 }
 0x9c8   :  { %3627 = vmatmul.mubr.msk.f32.gmra.mxu1 %vm799_vm9, %v4066_v4  ;;  %v942_v4 = vld [vmem:[#allocation2 + $0x180] sm:$0xff]  ;;  %v4385_v37 = vpop.permute.xlu0 %1431 }
 0x9c9   :  { %3629 = vmatprep.mubr.msk.f32.mxu1 %vm799_vm9, %v935_v18  ;;  %v4353_v22 = vpop.permute.xlu1 %1417 }
 0x9cc   :  { %3630 = vmatmul.mubr.msk.f32.gmra.mxu1 %vm799_vm9, %v936_v16  ;;  %v4390_v40 = vpop.permute.xlu0 %1435 }
 0x9cd   :  { %3632 = vmatprep.mubr.msk.f32.mxu1 %vm799_vm9, %v937_v13  ;;  %v4355_v23 = vpop.permute.xlu1 %1421 }
 0x9d0   :  { %3633 = vmatmul.mubr.msk.f32.gmra.mxu1 %vm799_vm9, %v938_v11  ;;  %v4395_v45 = vpop.permute.xlu0 %1439 }
 0x9d1   :  { %3635 = vmatprep.mubr.msk.f32.mxu1 %vm799_vm9, %v939_v9  ;;  %v4359_v55 = vpop.permute.xlu1 %1425 }
 0x9d4   :  { %3636 = vmatmul.mubr.msk.f32.gmra.mxu1 %vm799_vm9, %v940_v5  ;;  %v1590_v49 = vpop.permute.xlu0 %1589 }
 0x9d5   :  { %3638 = vmatprep.mubr.msk.f32.mxu1 %vm799_vm9, %v941_v7  ;;  %v4363_v58 = vpop.permute.xlu1 %1429 }
 0x9d8   :  { %3639 = vmatmul.mubr.msk.f32.gmra.mxu1 %vm799_vm9, %v942_v4 }
 0x9d9   :  { %v4367_v3 = vpop.permute.xlu1 %1433 }
 0x9dd   :  { %v4371_v12 = vpop.permute.xlu1 %1437 }
 0x9e1   :  { %v1592_v29 = vpop.permute.xlu1 %1591 }
 0xa6c   :  { %v3607_v14 = vpop.f32.mrf.mxu1 }
 0xa6e   :  { %v1084_v15 = vpop.f32.mrf.mxu1 }
 0xa6f   :  { %3645 = vmatprep.mubr.msk.f32.mxu0 %vm721_vm8, %v1084_v15 }
 0xa70   :  { %v3610_v26 = vpop.f32.mrf.mxu1  ;;  %3646 = vmatmul.mubr.msk.f32.vlgmr.msra.gmra.mxu0 %vm721_vm8, %v3607_v14 }
 0xa71   :  { %3670 = vmatpush3.msra.mxu0 %v1481_v17 }
 0xa72   :  { %v1094_v31 = vpop.f32.mrf.mxu1  ;;  %3671 = vmatprep.subr.mxu0 %v1479_v24 }
 0xa73   :  { %3648 = vmatprep.mubr.msk.f32.mxu0 %vm721_vm8, %v1094_v31  ;;  %3672 = vmatpush3.msra.mxu0 %v1479_v24 }
 0xa74   :  { %v3613_v32 = vpop.f32.mrf.mxu1  ;;  %3649 = vmatmul.mubr.msk.f32.gmra.mxu0 %vm721_vm8, %v3610_v26  ;;  %3679 = vmatprep.subr.mxu0 %v1592_v29 }
 0xa76   :  { %v1104_v33 = vpop.f32.mrf.mxu1 }
 0xa77   :  { %3651 = vmatprep.mubr.msk.f32.mxu0 %vm721_vm8, %v1104_v33 }
 0xa78   :  { %v3616_v56 = vpop.f32.mrf.mxu1  ;;  %3652 = vmatmul.mubr.msk.f32.gmra.mxu0 %vm721_vm8, %v3613_v32 }
 0xa7a   :  { %v1114_v35 = vpop.f32.mrf.mxu1 }
 0xa7b   :  { %3654 = vmatprep.mubr.msk.f32.mxu0 %vm721_vm8, %v1114_v35 }
 0xa7c   :  { %v3619_v36 = vpop.f32.mrf.mxu1  ;;  %3655 = vmatmul.mubr.msk.f32.gmra.mxu0 %vm721_vm8, %v3616_v56 }
 0xa7e   :  { %v1124_v38 = vpop.f32.mrf.mxu1 }
 0xa7f   :  { %3657 = vmatprep.mubr.msk.f32.mxu0 %vm721_vm8, %v1124_v38 }
 0xa80   :  { %v3622_v0 = vpop.f32.mrf.mxu1  ;;  %3658 = vmatmul.mubr.msk.f32.gmra.mxu0 %vm721_vm8, %v3619_v36 }
 0xa82   :  { %v1134_v39 = vpop.f32.mrf.mxu1 }
 0xa83   :  { %3660 = vmatprep.mubr.msk.f32.mxu0 %vm721_vm8, %v1134_v39 }
 0xa84   :  { %v3625_v41 = vpop.f32.mrf.mxu1  ;;  %3661 = vmatmul.mubr.msk.f32.gmra.mxu0 %vm721_vm8, %v3622_v0 }
 0xa86   :  { %v1144_v43 = vpop.f32.mrf.mxu1 }
 0xa87   :  { %3663 = vmatprep.mubr.msk.f32.mxu0 %vm721_vm8, %v1144_v43 }
 0xa88   :  { %v3628_v44 = vpop.f32.mrf.mxu1  ;;  %3664 = vmatmul.mubr.msk.f32.gmra.mxu0 %vm721_vm8, %v3625_v41 }
 0xa8a   :  { %v1154_v46 = vpop.f32.mrf.mxu1 }
 0xa8b   :  { %3666 = vmatprep.mubr.msk.f32.mxu0 %vm721_vm8, %v1154_v46 }
 0xa8c   :  { %v3631_v47 = vpop.f32.mrf.mxu1  ;;  %3667 = vmatmul.mubr.msk.f32.gmra.mxu0 %vm721_vm8, %v3628_v44 }
 0xa8e   :  { %v1164_v48 = vpop.f32.mrf.mxu1 }
 0xa8f   :  { %3673 = vmatprep.mubr.msk.f32.mxu0 %vm721_vm8, %v1164_v48 }
 0xa90   :  { %v3634_v50 = vpop.f32.mrf.mxu1  ;;  %3674 = vmatmul.mubr.msk.f32.vlgmr.msra.gmra.mxu0 %vm721_vm8, %v3631_v47 }
 0xa91   :  { %3680 = vmatpush3.msra.mxu0 %v1592_v29 }
 0xa92   :  { %v1174_v51 = vpop.f32.mrf.mxu1  ;;  %3681 = vmatprep.subr.mxu0 %v1590_v49 }
 0xa93   :  { %3676 = vmatprep.mubr.msk.f32.mxu0 %vm721_vm8, %v1174_v51  ;;  %3682 = vmatpush3.msra.mxu0 %v1590_v49 }
 0xa94   :  { %3677 = vmatmul.mubr.msk.f32.gmra.mxu0 %vm721_vm8, %v3634_v50  ;;  %v3637_v52 = vpop.f32.mrf.mxu1 }
 0xa96   :  { %v1184_v53 = vpop.f32.mrf.mxu1 }
 0xa97   :  { %3683 = vmatprep.mubr.msk.f32.mxu0 %vm721_vm8, %v1184_v53 }
 0xa98   :  { %v3640_v18 = vpop.f32.mrf.mxu1  ;;  %3684 = vmatmul.mubr.msk.f32.vlgmr.msra.gmra.mxu0 %vm721_vm8, %v3637_v52 }
 0xa9a   :  { %v1194_v16 = vpop.f32.mrf.mxu1 }
 0xa9b   :  { %3686 = vmatprep.mubr.msk.f32.mxu0 %vm721_vm8, %v1194_v16 }
 0xa9c   :  { %3687 = vmatmul.mubr.msk.f32.gmra.mxu0 %vm721_vm8, %v3640_v18 }
 0xb30   :  { %v3647_v13 = vpop.f32.mrf.mxu0 }
 0xb31   :  { %v1336_v51 = vadd.f32 %v3647_v13, %v4357_v54 }
 0xb32   :  { %v1330_v11 = vpop.f32.mrf.mxu0 }
 0xb33   :  { %v1331_v9 = vadd.f32 %v1330_v11, %v4357_v54  ;;  %v1458_v53 = vmul.f32 %v4361_v57, %v1336_v51 }
 0xb34   :  { %v3650_v5 = vpop.f32.mrf.mxu0 }
 0xb35   :  { %v1457_v7 = vmul.f32 %v4349_v20, %v1331_v9  ;;  %v1346_v18 = vadd.f32 %v3650_v5, %v4357_v54 }
 0xb36   :  { %v1340_v4 = vpop.f32.mrf.mxu0 }
 0xb37   :  { %3697 = vmatprep.mubr.msk.f32.mxu1 %vm721_vm8, %v1457_v7  ;;  %v1341_v52 = vadd.f32 %v1340_v4, %v4357_v54  ;;  %v1460_v13 = vmul.f32 %v4365_v60, %v1346_v18 }
 0xb38   :  { %v3653_v17 = vpop.f32.mrf.mxu0 }
 0xb39   :  { %v1459_v16 = vmul.f32 %v4351_v21, %v1341_v52  ;;  %v1356_v11 = vadd.f32 %v3653_v17, %v4357_v54 }
 0xb3a   :  { %v1350_v24 = vpop.f32.mrf.mxu0 }
 0xb3b   :  { %v1462_v21 = vmul.f32 %v4369_v10, %v1356_v11 }
 0xb3c   :  { %v3656_v14 = vpop.f32.mrf.mxu0 }
 0xb3d   :  { %v1366_v57 = vadd.f32 %v3656_v14, %v4357_v54 }
 0xb3e   :  { %v1360_v15 = vpop.f32.mrf.mxu0 }
 0xb3f   :  { %v1361_v7 = vadd.f32 %v1360_v15, %v4357_v54 }
 0xb40   :  { %v3659_v26 = vpop.f32.mrf.mxu0 }
 0xb41   :  { %v1463_v5 = vmul.f32 %v4355_v23, %v1361_v7  ;;  %v1376_v60 = vadd.f32 %v3659_v26, %v4357_v54  ;;  %v1701_v7 = vld [vmem:[#allocation2 + $0x90] sm:$0xff] }
 0xb42   :  { %v1370_v29 = vpop.f32.mrf.mxu0 }
 0xb43   :  { %v1371_v4 = vadd.f32 %v1370_v29, %v4357_v54  ;;  %v1466_v23 = vmul.f32 %v4380_v34, %v1376_v60 }
 0xb44   :  { %v3662_v31 = vpop.f32.mrf.mxu0 }
 0xb45   :  { %v1465_v17 = vmul.f32 %v4359_v55, %v1371_v4  ;;  %v1386_v10 = vadd.f32 %v3662_v31, %v4357_v54 }
 0xb46   :  { %v1380_v32 = vpop.f32.mrf.mxu0 }
 0xb47   :  { %v1468_v55 = vmul.f32 %v4385_v37, %v1386_v10 }
 0xb48   :  { %v3665_v33 = vpop.f32.mrf.mxu0 }
 0xb4a   :  { %v1390_v56 = vpop.f32.mrf.mxu0 }
 0xb4b   :  { %v1391_v15 = vadd.f32 %v1390_v56, %v4357_v54 }
 0xb4c   :  { %v4410_v35 = vpop.f32.mrf.mxu0 }
 0xb4d   :  { %v1469_v26 = vmul.f32 %v4367_v3, %v1391_v15  ;;  %v1406_v34 = vadd.f32 %v4410_v35, %v4357_v54 }
 0xb4e   :  { %v1400_v36 = vpop.f32.mrf.mxu0 }
 0xb4f   :  { %v1401_v29 = vadd.f32 %v1400_v36, %v4357_v54  ;;  %v1472_v37 = vmul.f32 %v4395_v45, %v1406_v34  ;;  %v1695_v45 = vld [vmem:[#allocation2 + $0x60] sm:$0xff] }
 0xb50   :  { %v3675_v38 = vpop.f32.mrf.mxu0 }
 0xb51   :  { %v1572_v47 = vadd.f32 %v3675_v38, %v4347_v19  ;;  %v1471_v31 = vmul.f32 %v4371_v12, %v1401_v29  ;;  %v1705_v29 = vld [vmem:[#allocation2 + $0xb0] sm:$0xff] }
 0xb52   :  { %v1566_v0 = vpop.f32.mrf.mxu0 }
 0xb53   :  { %v1567_v50 = vadd.f32 %v1566_v0, %v4347_v19 }
 0xb54   :  { %v3678_v39 = vpop.f32.mrf.mxu0 }
 0xb55   :  { %v1582_v20 = vadd.f32 %v3678_v39, %v4347_v19 }
 0xb56   :  { %v1576_v41 = vpop.f32.mrf.mxu0 }
 0xb57   :  { %v1577_v43 = vadd.f32 %v1576_v41, %v4347_v19  ;;  %3689 = vmatprep.subr.msk.mxu1 %vm721_vm8, %v1582_v20  ;;  %v1351_v19 = vadd.f32 %v1350_v24, %v4357_v54  ;;  %v1381_v24 = vadd.f32 %v1380_v32, %v4357_v54  ;;  %v1697_v41 = vld [vmem:[#allocation2 + $0x70] sm:$0xff] }
 0xb58   :  { %3690 = vmatpush3.xpose.msk.msra.mxu1 %vm721_vm8, %v1582_v20  ;;  %v4416_v44 = vpop.f32.mrf.mxu0 }
 0xb59   :  { %3691 = vmatprep.subr.msk.mxu1 %vm721_vm8, %v1577_v43  ;;  %2096 = vrot.lane.b32.xlu0 %v4416_v44, %s4011_s2  ;;  %v1461_v9 = vmul.f32 %v4353_v22, %v1351_v19  ;;  %v1464_v22 = vmul.f32 %v4375_v28, %v1366_v57  ;;  %v1467_v14 = vmul.f32 %v4363_v58, %v1381_v24  ;;  %v1703_v24 = vld [vmem:[#allocation2 + $0xa0] sm:$0xff] }
 0xb5a   :  { %v4421_v46 = vpop.f32.mrf.mxu0  ;;  %v1396_v28 = vadd.f32 %v3665_v33, %v4357_v54 }
 0xb5b   :  { %2094 = vrot.lane.b32.xlu1 %v4421_v46, %s4011_s2 }
 0xb5c   :  { %3692 = vmatpush3.xpose.msk.msra.mxu1 %vm721_vm8, %v1577_v43  ;;  %v4427_v48 = vpop.f32.mrf.mxu0  ;;  %v1470_v58 = vmul.f32 %v4390_v40, %v1396_v28 }
 0xb5d   :  { %3693 = vmatprep.subr.msk.mxu1 %vm721_vm8, %v1572_v47  ;;  %2100 = vrot.lane.b32.xlu0 %v4427_v48, %s4011_s2 }
 0xb5e   :  { %v4432_v49 = vpop.f32.mrf.mxu0 }
 0xb5f   :  { %2098 = vrot.lane.b32.xlu1 %v4432_v49, %s4011_s2 }
 0xb60   :  { %3694 = vmatpush3.xpose.msk.msra.mxu1 %vm721_vm8, %v1572_v47  ;;  %v4504_v47 = vld [vmem:[#allocation2 + $0x68] sm:$0xff] }
 0xb61   :  { %3695 = vmatprep.subr.msk.mxu1 %vm721_vm8, %v1567_v50 }
 0xb64   :  { %3696 = vmatpush3.xpose.msk.msra.mxu1 %vm721_vm8, %v1567_v50 }
 0xb67   :  { %3698 = vmatmul.mubr.msk.f32.vlgmr.msra.gmra.mxu1 %vm721_vm8, %v1458_v53  ;;  %v1699_v53 = vld [vmem:[#allocation2 + $0x80] sm:$0xff] }
 0xb68   :  { %3700 = vmatprep.mubr.msk.f32.mxu1 %vm721_vm8, %v1459_v16  ;;  %v4513_v16 = vld [vmem:[#allocation2 + $0x78] sm:$0xff] }
 0xb6b   :  { %3701 = vmatmul.mubr.msk.f32.gmra.mxu1 %vm721_vm8, %v1460_v13 }
 0xb6c   :  { %3703 = vmatprep.mubr.msk.f32.mxu1 %vm721_vm8, %v1461_v9 }
 0xb6f   :  { %3704 = vmatmul.mubr.msk.f32.gmra.mxu1 %vm721_vm8, %v1462_v21 }
 0xb70   :  { %3706 = vmatprep.mubr.msk.f32.mxu1 %vm721_vm8, %v1463_v5  ;;  %v1700_v5 = vld [vmem:[#allocation2 + $0x88] sm:$0xff] }
 0xb73   :  { %3707 = vmatmul.mubr.msk.f32.gmra.mxu1 %vm721_vm8, %v1464_v22 }
 0xb74   :  { %3709 = vmatprep.mubr.msk.f32.mxu1 %vm721_vm8, %v1465_v17 }
 0xb77   :  { %3710 = vmatmul.mubr.msk.f32.gmra.mxu1 %vm721_vm8, %v1466_v23 }
 0xb78   :  { %3712 = vmatprep.mubr.msk.f32.mxu1 %vm721_vm8, %v1467_v14  ;;  %v1702_v14 = vld [vmem:[#allocation2 + $0x98] sm:$0xff] }
 0xb7b   :  { %3713 = vmatmul.mubr.msk.f32.gmra.mxu1 %vm721_vm8, %v1468_v55 }
 0xb7c   :  { %3715 = vmatprep.mubr.msk.f32.mxu1 %vm721_vm8, %v1469_v26 }
 0xb7f   :  { %3716 = vmatmul.mubr.msk.f32.gmra.mxu1 %vm721_vm8, %v1470_v58 }
 0xb80   :  { %3718 = vmatprep.mubr.msk.f32.mxu1 %vm721_vm8, %v1471_v31  ;;  %v1704_v31 = vld [vmem:[#allocation2 + $0xa8] sm:$0xff] }
 0xb83   :  { %3719 = vmatmul.mubr.msk.f32.gmra.mxu1 %vm721_vm8, %v1472_v37 }
 0xbcb   :  { %v2097_v3 = vpop.permute.xlu0 %2096 }
 0xbcd   :  { %v2095_v32 = vpop.permute.xlu1 %2094 }
 0xbcf   :  { %v2101_v33 = vpop.permute.xlu0 %2100 }
 0xbd0   :  { %3721 = vmatprep.subr.mxu0 %v2101_v33 }
 0xbd1   :  { %3722 = vmatpush3.msra.mxu0 %v2101_v33  ;;  %v2099_v56 = vpop.permute.xlu1 %2098 }
 0xbd2   :  { %3723 = vmatprep.subr.mxu0 %v2099_v56 }
 0xbd3   :  { %3724 = vmatpush3.msra.mxu0 %v2099_v56  ;;  %v1707_v56 = vld [vmem:[#allocation2 + $0xc0] sm:$0xff] }
 0xbd4   :  { %3725 = vmatprep.subr.mxu0 %v2097_v3 }
 0xbd5   :  { %3726 = vmatpush3.msra.mxu0 %v2097_v3 }
 0xbd6   :  { %3727 = vmatprep.subr.mxu0 %v2095_v32 }
 0xbd7   :  { %3728 = vmatpush3.msra.mxu0 %v2095_v32 }
 0xbd8   :  { %3735 = vmatprep.subr.mxu0 %v4427_v48 }
 0xc27   :  { %v3699_v54 = vpop.f32.mrf.mxu1 }
 0xc28   :  { %v4488_v12 = vadd.f32 %v3699_v54, %v4303_v59 }
 0xc29   :  { %v1834_v40 = vpop.f32.mrf.mxu1 }
 0xc2a   :  { %v4491_v35 = vadd.f32 %v1834_v40, %v4297_v25  ;;  %v1917_v36 = vsel %vm1913_vm11, %v4488_v12, -inf }
 0xc2b   :  { %v3702_v38 = vpop.f32.mrf.mxu1  ;;  %1918 = vmax.xlane.f32.xlu1 %v1917_v36 }
 0xc2c   :  { %v4495_v0 = vadd.f32 %v3702_v38, %v1695_v45  ;;  %v1914_v39 = vsel %vm1913_vm11, %v4491_v35, -inf  ;;  %v1706_v45 = vld [vmem:[#allocation2 + $0xb8] sm:$0xff] }
 0xc2d   :  { %v1844_v20 = vpop.f32.mrf.mxu1  ;;  %1915 = vmax.xlane.f32.xlu0 %v1914_v39 }
 0xc2e   :  { %v4500_v59 = vadd.f32 %v1844_v20, %v4210_v30  ;;  %v1923_v25 = vsel %vm1913_vm11, %v4495_v0, -inf }
 0xc2f   :  { %v3705_v43 = vpop.f32.mrf.mxu1  ;;  %1924 = vmax.xlane.f32.xlu1 %v1923_v25 }
 0xc30   :  { %v4506_v50 = vadd.f32 %v3705_v43, %v1697_v41  ;;  %v1920_v51 = vsel %vm1913_vm11, %v4500_v59, -inf }
 0xc31   :  { %v1854_v52 = vpop.f32.mrf.mxu1  ;;  %1921 = vmax.xlane.f32.xlu0 %v1920_v51 }
 0xc32   :  { %v4511_v18 = vadd.f32 %v1854_v52, %v4504_v47  ;;  %v1929_v13 = vsel %vm1913_vm11, %v4506_v50, -inf }
 0xc33   :  { %v3708_v30 = vpop.f32.mrf.mxu1 }
 0xc34   :  { %v4515_v19 = vadd.f32 %v3708_v30, %v1699_v53  ;;  %v1926_v11 = vsel %vm1913_vm11, %v4511_v18, -inf }
 0xc35   :  { %v1864_v9 = vpop.f32.mrf.mxu1  ;;  %1930 = vmax.xlane.f32.xlu0 %v1929_v13  ;;  %1927 = vmax.xlane.f32.xlu1 %v1926_v11 }
 0xc36   :  { %v4522_v21 = vadd.f32 %v1864_v9, %v4513_v16  ;;  %v1935_v60 = vsel %vm1913_vm11, %v4515_v19, -inf }
 0xc37   :  { %v3711_v57 = vpop.f32.mrf.mxu1 }
 0xc38   :  { %v4524_v4 = vadd.f32 %v3711_v57, %v1701_v7  ;;  %v1932_v22 = vsel %vm1913_vm11, %v4522_v21, -inf }
 0xc39   :  { %v1874_v17 = vpop.f32.mrf.mxu1  ;;  %1933 = vmax.xlane.f32.xlu0 %v1932_v22  ;;  %1936 = vmax.xlane.f32.xlu1 %v1935_v60 }
 0xc3a   :  { %v4530_v23 = vadd.f32 %v1874_v17, %v1700_v5  ;;  %v1941_v28 = vsel %vm1913_vm11, %v4524_v4, -inf }
 0xc3b   :  { %v3714_v10 = vpop.f32.mrf.mxu1 }
 0xc3c   :  { %v4532_v15 = vadd.f32 %v3714_v10, %v1703_v24  ;;  %v1938_v55 = vsel %vm1913_vm11, %v4530_v23, -inf }
 0xc3d   :  { %v1884_v26 = vpop.f32.mrf.mxu1  ;;  %1939 = vmax.xlane.f32.xlu0 %v1938_v55  ;;  %1942 = vmax.xlane.f32.xlu1 %v1941_v28 }
 0xc3e   :  { %v4538_v58 = vadd.f32 %v1884_v26, %v1702_v14  ;;  %v1947_v32 = vsel %vm1913_vm11, %v4532_v15, -inf }
 0xc3f   :  { %v3717_v34 = vpop.f32.mrf.mxu1 }
 0xc40   :  { %v4540_v37 = vadd.f32 %v3717_v34, %v1705_v29  ;;  %v1944_v3 = vsel %vm1913_vm11, %v4538_v58, -inf }
 0xc41   :  { %v1894_v33 = vpop.f32.mrf.mxu1  ;;  %1945 = vmax.xlane.f32.xlu0 %v1944_v3  ;;  %1948 = vmax.xlane.f32.xlu1 %v1947_v32 }
 0xc42   :  { %v4546_v54 = vadd.f32 %v1894_v33, %v1704_v31  ;;  %v1953_v39 = vsel %vm1913_vm11, %v4540_v37, -inf }
 0xc43   :  { %v3720_v40 = vpop.f32.mrf.mxu1 }
 0xc44   :  { %v4548_v36 = vadd.f32 %v3720_v40, %v1707_v56  ;;  %v1950_v38 = vsel %vm1913_vm11, %v4546_v54, -inf }
 0xc45   :  { %v1904_v20 = vpop.f32.mrf.mxu1  ;;  %1951 = vmax.xlane.f32.xlu0 %v1950_v38  ;;  %1954 = vmax.xlane.f32.xlu1 %v1953_v39 }
 0xc46   :  { %v4554_v41 = vadd.f32 %v1904_v20, %v1706_v45  ;;  %v1959_v43 = vsel %vm1913_vm11, %v4548_v36, -inf }
 0xc48   :  { %v1956_v25 = vsel %vm1913_vm11, %v4554_v41, -inf }
 0xc49   :  { %1957 = vmax.xlane.f32.xlu0 %v1956_v25  ;;  %1960 = vmax.xlane.f32.xlu1 %v1959_v43 }
 0xc5a   :  { %2304 = vrot.lane.b32.xlu1 %v4432_v49, %s4027_s7 }
 0xc5e   :  { %2302 = vrot.lane.b32.xlu1 %v4416_v44, %s4027_s7 }
 0xc5f   :  { %2306 = vrot.lane.b32.xlu0 %v4427_v48, %s4027_s7 }
 0xc62   :  { %2415 = vrot.lane.b32.xlu1 %v4427_v48, %s4030_s9 }
 0xc63   :  { %2300 = vrot.lane.b32.xlu0 %v4421_v46, %s4027_s7 }
 0xc67   :  { %2413 = vrot.lane.b32.xlu0 %v4432_v49, %s4030_s9 }
 0xcb4   :  { %v1919_v51 = vpop.xlane.xlu1 %1918 }
 0xcb5   :  { %v1963_v52 = vsub.f32 %v4488_v12, %v1919_v51 }
 0xcb6   :  { %v1916_v53 = vpop.xlane.xlu0 %1915 }
 0xcb7   :  { %v1980_v30 = vmul.f32 1.442695, %v1963_v52  ;;  %v1962_v13 = vsub.f32 %v4491_v35, %v1916_v53 }
 0xcb8   :  { %v1925_v11 = vpop.xlane.xlu1 %1924 }
 0xcb9   :  { %3901 = vpow2.f32 %v1980_v30  ;;  %v1978_v9 = vmul.f32 1.442695, %v1962_v13  ;;  %v1965_v7 = vsub.f32 %v4495_v0, %v1925_v11 }
 0xcba   :  { %v1922_v57 = vpop.xlane.xlu0 %1921 }
 0xcbb   :  { %3903 = vpow2.f32 %v1978_v9  ;;  %v1984_v5 = vmul.f32 1.442695, %v1965_v7  ;;  %v1964_v22 = vsub.f32 %v4500_v59, %v1922_v57 }
 0xcbd   :  { %3905 = vpow2.f32 %v1984_v5  ;;  %v1982_v60 = vmul.f32 1.442695, %v1964_v22 }
 0xcbe   :  { %v1931_v17 = vpop.xlane.xlu0 %1930  ;;  %v1928_v24 = vpop.xlane.xlu1 %1927 }
 0xcbf   :  { %3907 = vpow2.f32 %v1982_v60  ;;  %v1967_v12 = vsub.f32 %v4506_v50, %v1931_v17  ;;  %v1966_v10 = vsub.f32 %v4511_v18, %v1928_v24 }
 0xcc1   :  { %v1988_v35 = vmul.f32 1.442695, %v1967_v12  ;;  %v1986_v14 = vmul.f32 1.442695, %v1966_v10 }
 0xcc2   :  { %v1934_v55 = vpop.xlane.xlu0 %1933  ;;  %v1937_v28 = vpop.xlane.xlu1 %1936 }
 0xcc3   :  { %3909 = vpow2.f32 %v1988_v35  ;;  %v1968_v0 = vsub.f32 %v4522_v21, %v1934_v55  ;;  %v1969_v26 = vsub.f32 %v4515_v19, %v1937_v28 }
 0xcc4   :  { %3911 = vpow2.f32 %v1986_v14 }
 0xcc5   :  { %v1990_v59 = vmul.f32 1.442695, %v1968_v0  ;;  %v1992_v29 = vmul.f32 1.442695, %v1969_v26 }
 0xcc6   :  { %v4580_v34 = vpop.eup %3901  ;;  %v1940_v31 = vpop.xlane.xlu0 %1939 }
 0xcc7   :  { %v1943_v3 = vpop.xlane.xlu1 %1942  ;;  %3913 = vpow2.f32 %v1990_v59  ;;  %v1970_v50 = vsub.f32 %v4530_v23, %v1940_v31  ;;  %v2013_v32 = vsel %vm1913_vm11, %v4580_v34, 0.0 }
 0xcc8   :  { %v1971_v18 = vsub.f32 %v4524_v4, %v1943_v3  ;;  %v4586_v33 = vpop.eup %3903  ;;  %3915 = vpow2.f32 %v1992_v29  ;;  %2014 = vadd.xlane.f32.xlu1 %v2013_v32 }
 0xcc9   :  { %v1994_v19 = vmul.f32 1.442695, %v1970_v50  ;;  %v2010_v56 = vsel %vm1913_vm11, %v4586_v33, 0.0 }
 0xcca   :  { %v1996_v21 = vmul.f32 1.442695, %v1971_v18  ;;  %v4590_v40 = vpop.eup %3905  ;;  %v1946_v45 = vpop.xlane.xlu0 %1945  ;;  %2011 = vadd.xlane.f32.xlu0 %v2010_v56  ;;  %v4658_v56 = vld [vmem:[#allocation2 + $0xe0] sm:$0xf] }
 0xccb   :  { %v1949_v38 = vpop.xlane.xlu1 %1948  ;;  %3917 = vpow2.f32 %v1994_v19  ;;  %v1972_v4 = vsub.f32 %v4538_v58, %v1946_v45  ;;  %v2019_v39 = vsel %vm1913_vm11, %v4590_v40, 0.0  ;;  %v2523_v45 = vld [vmem:[#allocation2 + $0x70] sm:$0xf] }
 0xccc   :  { %v1973_v23 = vsub.f32 %v4532_v15, %v1949_v38  ;;  %v4596_v20 = vpop.eup %3907  ;;  %3919 = vpow2.f32 %v1996_v21  ;;  %2020 = vadd.xlane.f32.xlu1 %v2019_v39  ;;  %v4663_v38 = vld [vmem:[#allocation2 + $0xd8] sm:$0xff] }
 0xccd   :  { %v1998_v25 = vmul.f32 1.442695, %v1972_v4  ;;  %v2016_v51 = vsel %vm1913_vm11, %v4596_v20, 0.0 }
 0xcce   :  { %v2000_v43 = vmul.f32 1.442695, %v1973_v23  ;;  %v1952_v52 = vpop.xlane.xlu0 %1951  ;;  %2017 = vadd.xlane.f32.xlu0 %v2016_v51 }
 0xccf   :  { %v1955_v53 = vpop.xlane.xlu1 %1954  ;;  %3921 = vpow2.f32 %v1998_v25  ;;  %v1974_v58 = vsub.f32 %v4546_v54, %v1952_v52 }
 0xcd0   :  { %v1975_v15 = vsub.f32 %v4540_v37, %v1955_v53  ;;  %v4602_v30 = vpop.eup %3909  ;;  %3923 = vpow2.f32 %v2000_v43 }
 0xcd1   :  { %v4604_v13 = vpop.eup %3911  ;;  %v2002_v11 = vmul.f32 1.442695, %v1974_v58  ;;  %v2025_v7 = vsel %vm1913_vm11, %v4602_v30, 0.0 }
 0xcd2   :  { %v2004_v9 = vmul.f32 1.442695, %v1975_v15  ;;  %v1958_v57 = vpop.xlane.xlu0 %1957  ;;  %2026 = vadd.xlane.f32.xlu1 %v2025_v7  ;;  %v2022_v5 = vsel %vm1913_vm11, %v4604_v13, 0.0 }
 0xcd3   :  { %v1961_v22 = vpop.xlane.xlu1 %1960  ;;  %3925 = vpow2.f32 %v2002_v11  ;;  %v1976_v54 = vsub.f32 %v4554_v41, %v1958_v57  ;;  %2023 = vadd.xlane.f32.xlu0 %v2022_v5 }
 0xcd4   :  { %v1977_v37 = vsub.f32 %v4548_v36, %v1961_v22  ;;  %v4612_v60 = vpop.eup %3913  ;;  %3927 = vpow2.f32 %v2004_v9 }
 0xcd5   :  { %v4614_v17 = vpop.eup %3915  ;;  %v2006_v24 = vmul.f32 1.442695, %v1976_v54  ;;  %v2028_v10 = vsel %vm1913_vm11, %v4612_v60, 0.0 }
 0xcd6   :  { %v2008_v12 = vmul.f32 1.442695, %v1977_v37  ;;  %v2031_v35 = vsel %vm1913_vm11, %v4614_v17, 0.0  ;;  %v4669_v23 = vpop.permute.xlu0 %2306 }
 0xcd7   :  { %3929 = vpow2.f32 %v2006_v24  ;;  %2029 = vadd.xlane.f32.xlu0 %v2028_v10  ;;  %2032 = vadd.xlane.f32.xlu1 %v2031_v35  ;;  %v4667_v4 = vpop.permute.xlu1 %2304 }
 0xcd8   :  { %v4620_v41 = vpop.eup %3917  ;;  %3931 = vpow2.f32 %v2008_v12 }
 0xcd9   :  { %v4622_v36 = vpop.eup %3919  ;;  %v2034_v14 = vsel %vm1913_vm11, %v4620_v41, 0.0 }
 0xcda   :  { %v2037_v55 = vsel %vm1913_vm11, %v4622_v36, 0.0  ;;  %v4673_v39 = vpop.permute.xlu0 %2300 }
 0xcdb   :  { %2035 = vadd.xlane.f32.xlu1 %v2034_v14  ;;  %2038 = vadd.xlane.f32.xlu0 %v2037_v55 }
 0xcdc   :  { %v4628_v28 = vpop.eup %3921 }
 0xcdd   :  { %v4630_v0 = vpop.eup %3923  ;;  %v2040_v26 = vsel %vm1913_vm11, %v4628_v28, 0.0 }
 0xcde   :  { %v2043_v59 = vsel %vm1913_vm11, %v4630_v0, 0.0  ;;  %v4677_v43 = vpop.permute.xlu0 %2413 }
 0xcdf   :  { %2041 = vadd.xlane.f32.xlu1 %v2040_v26  ;;  %2044 = vadd.xlane.f32.xlu0 %v2043_v59 }
 0xce0   :  { %v4636_v29 = vpop.eup %3925 }
 0xce1   :  { %v4638_v31 = vpop.eup %3927  ;;  %v2046_v3 = vsel %vm1913_vm11, %v4636_v29, 0.0 }
 0xce2   :  { %v2049_v50 = vsel %vm1913_vm11, %v4638_v31, 0.0 }
 0xce3   :  { %2047 = vadd.xlane.f32.xlu0 %v2046_v3  ;;  %2050 = vadd.xlane.f32.xlu1 %v2049_v50 }
 0xce4   :  { %v4644_v18 = vpop.eup %3929 }
 0xce5   :  { %v4646_v32 = vpop.eup %3931  ;;  %v2052_v19 = vsel %vm1913_vm11, %v4644_v18, 0.0 }
 0xce6   :  { %v2055_v21 = vsel %vm1913_vm11, %v4646_v32, 0.0 }
 0xce7   :  { %2053 = vadd.xlane.f32.xlu0 %v2052_v19  ;;  %2056 = vadd.xlane.f32.xlu1 %v2055_v21 }
 0xcf8   :  { %2411 = vrot.lane.b32.xlu1 %v4416_v44, %s4030_s9 }
 0xcfc   :  { %2526 = vrot.lane.b32.xlu1 %v4504_v47, %s4013_s21  ;;  %v4671_v47 = vpop.permute.xlu1 %2302 }
 0xcfd   :  { %2409 = vrot.lane.b32.xlu0 %v4421_v46, %s4030_s9 }
 0xd00   :  { %2532 = vrot.lane.b32.xlu1 %v4658_v56, %s4013_s21  ;;  %v4675_v25 = vpop.permute.xlu1 %2415 }
 0xd01   :  { %2528 = vrot.lane.b32.xlu0 %v2523_v45, %s4013_s21 }
 0xd05   :  { %2530 = vrot.lane.b32.xlu0 %v4663_v38, %s4013_s21 }
 0xd51   :  { %v2015_v51 = vpop.xlane.xlu1 %2014 }
 0xd53   :  { %v2012_v52 = vpop.xlane.xlu0 %2011 }
 0xd55   :  { %v2021_v53 = vpop.xlane.xlu1 %2020 }
 0xd57   :  { %v2018_v58 = vpop.xlane.xlu0 %2017 }
 0xd5b   :  { %v2027_v15 = vpop.xlane.xlu1 %2026 }
 0xd5c   :  { %v2024_v11 = vpop.xlane.xlu0 %2023  ;;  %3933 = vrcp.f32 %v2027_v15 }
 0xd5d   :  { %3935 = vrcp.f32 %v2024_v11 }
 0xd5e   :  { %3937 = vrcp.f32 %v2012_v52 }
 0xd60   :  { %v2030_v9 = vpop.xlane.xlu0 %2029  ;;  %v2033_v7 = vpop.xlane.xlu1 %2032 }
 0xd61   :  { %3939 = vrcp.f32 %v2030_v9 }
 0xd62   :  { %3941 = vrcp.f32 %v2033_v7 }
 0xd63   :  { %3943 = vrcp.f32 %v2015_v51 }
 0xd64   :  { %v2039_v57 = vpop.xlane.xlu0 %2038  ;;  %v2036_v5 = vpop.xlane.xlu1 %2035  ;;  %3945 = vrcp.f32 %v2018_v58 }
 0xd65   :  { %3947 = vrcp.f32 %v2021_v53 }
 0xd68   :  { %v2045_v22 = vpop.xlane.xlu0 %2044  ;;  %v2042_v54 = vpop.xlane.xlu1 %2041 }
 0xd69   :  { %v3934_v37 = vpop.eup %3933 }
 0xd6a   :  { %v3936_v24 = vpop.eup %3935  ;;  %v2079_v12 = vmul.f32 %v3934_v37, %v4602_v30 }
 0xd6b   :  { %v2078_v10 = vmul.f32 %v3936_v24, %v4604_v13  ;;  %v3938_v55 = vpop.eup %3937 }
 0xd6c   :  { %v2048_v35 = vpop.xlane.xlu0 %2047  ;;  %v2051_v14 = vpop.xlane.xlu1 %2050  ;;  %v2074_v21 = vmul.f32 %v3938_v55, %v4586_v33 }
 0xd6d   :  { %3949 = vrcp.f32 %v2048_v35  ;;  %3729 = vmatprep.mubr.msk.f32.mxu0 %vm1913_vm11, %v2078_v10 }
 0xd6e   :  { %v3940_v26 = vpop.eup %3939  ;;  %3951 = vrcp.f32 %v2051_v14  ;;  %3730 = vmatmul.mubr.msk.f32.vlgmr.msra.gmra.mxu0 %vm1913_vm11, %v2079_v12 }
 0xd6f   :  { %v3942_v59 = vpop.eup %3941  ;;  %3736 = vmatpush3.msra.mxu0 %v4427_v48  ;;  %v2080_v3 = vmul.f32 %v3940_v26, %v4612_v60  ;;  %3953 = vrcp.f32 %v2036_v5 }
 0xd70   :  { %3737 = vmatprep.subr.mxu0 %v4432_v49  ;;  %v2054_v30 = vpop.xlane.xlu0 %2053  ;;  %v2057_v13 = vpop.xlane.xlu1 %2056  ;;  %v2081_v50 = vmul.f32 %v3942_v59, %v4614_v17 }
 0xd71   :  { %v3944_v19 = vpop.eup %3943  ;;  %3955 = vrcp.f32 %v2054_v30  ;;  %3738 = vmatpush3.msra.mxu0 %v4432_v49  ;;  %3732 = vmatprep.mubr.msk.f32.mxu0 %vm1913_vm11, %v2080_v3 }
 0xd72   :  { %v3946_v45 = vpop.eup %3945  ;;  %3957 = vrcp.f32 %v2057_v13  ;;  %3739 = vmatprep.subr.mxu0 %v4416_v44  ;;  %3733 = vmatmul.mubr.msk.f32.gmra.mxu0 %vm1913_vm11, %v2081_v50  ;;  %v2075_v48 = vmul.f32 %v3944_v19, %v4580_v34 }
 0xd73   :  { %3740 = vmatpush3.msra.mxu0 %v4416_v44  ;;  %3743 = vmatprep.mubr.msk.f32.mxu0 %vm1913_vm11, %v2074_v21  ;;  %3959 = vrcp.f32 %v2039_v57  ;;  %v3948_v49 = vpop.eup %3947  ;;  %v2076_v33 = vmul.f32 %v3946_v45, %v4596_v20 }
 0xd74   :  { %3741 = vmatprep.subr.mxu0 %v4421_v46  ;;  %3961 = vrcp.f32 %v2042_v54  ;;  %v2077_v44 = vmul.f32 %v3948_v49, %v4590_v40  ;;  %v2410_v52 = vpop.permute.xlu0 %2409 }
 0xd75   :  { %3742 = vmatpush3.msra.mxu0 %v4421_v46  ;;  %3963 = vrcp.f32 %v2045_v22 }
 0xd76   :  { %3749 = vmatprep.subr.mxu0 %v4669_v23  ;;  %3744 = vmatmul.mubr.msk.f32.vlgmr.msra.gmra.mxu0 %vm1913_vm11, %v2075_v48  ;;  %v3979_v48 = vld [vmem:[%s4835_s0] sm:$0xff] }
 0xd77   :  { %3750 = vmatpush3.msra.mxu0 %v4669_v23  ;;  %3746 = vmatprep.mubr.msk.f32.mxu0 %vm1913_vm11, %v2076_v33 }
 0xd78   :  { %3751 = vmatprep.subr.mxu0 %v4667_v4  ;;  %v2529_v45 = vpop.permute.xlu0 %2528 }
 0xd79   :  { %3752 = vmatpush3.msra.mxu0 %v4667_v4 }
 0xd7a   :  { %v3950_v34 = vpop.eup %3949  ;;  %3753 = vmatprep.subr.mxu0 %v4671_v47  ;;  %3747 = vmatmul.mubr.msk.f32.gmra.mxu0 %vm1913_vm11, %v2077_v44 }
 0xd7b   :  { %v3952_v46 = vpop.eup %3951  ;;  %3754 = vmatpush3.msra.mxu0 %v4671_v47  ;;  %v2086_v20 = vmul.f32 %v3950_v34, %v4636_v29  ;;  %v2412_v47 = vpop.permute.xlu1 %2411 }
 0xd7c   :  { %v2087_v60 = vmul.f32 %v3952_v46, %v4638_v31  ;;  %3755 = vmatprep.subr.mxu0 %v4673_v39  ;;  %v3954_v17 = vpop.eup %3953  ;;  %v2531_v44 = vpop.permute.xlu0 %2530 }
 0xd7d   :  { %3756 = vmatpush3.msra.mxu0 %v4673_v39  ;;  %3757 = vmatprep.mubr.msk.f32.mxu0 %vm1913_vm11, %v2086_v20  ;;  %v2082_v39 = vmul.f32 %v3954_v17, %v4620_v41 }
 0xd7e   :  { %v3956_v40 = vpop.eup %3955  ;;  %3763 = vmatprep.subr.mxu0 %v4675_v25  ;;  %3758 = vmatmul.mubr.msk.f32.vlgmr.msra.gmra.mxu0 %vm1913_vm11, %v2087_v60 }
 0xd7f   :  { %v3958_v4 = vpop.eup %3957  ;;  %3764 = vmatpush3.msra.mxu0 %v4675_v25  ;;  %v2088_v23 = vmul.f32 %v3956_v40, %v4644_v18 }
 0xd80   :  { %3765 = vmatprep.subr.mxu0 %v4677_v43  ;;  %v2089_v29 = vmul.f32 %v3958_v4, %v4646_v32  ;;  %v3960_v31 = vpop.eup %3959 }
 0xd81   :  { %3766 = vmatpush3.msra.mxu0 %v4677_v43  ;;  %3760 = vmatprep.mubr.msk.f32.mxu0 %vm1913_vm11, %v2088_v23  ;;  %v3962_v51 = vpop.eup %3961  ;;  %v2083_v18 = vmul.f32 %v3960_v31, %v4622_v36  ;;  %v2527_v43 = vpop.permute.xlu1 %2526 }
 0xd82   :  { %3767 = vmatprep.subr.mxu0 %v2412_v47  ;;  %3761 = vmatmul.mubr.msk.f32.gmra.mxu0 %vm1913_vm11, %v2089_v29  ;;  %v3964_v32 = vpop.eup %3963  ;;  %v2084_v25 = vmul.f32 %v3962_v51, %v4628_v28 }
 0xd83   :  { %3768 = vmatpush3.msra.mxu0 %v2412_v47  ;;  %3771 = vmatprep.mubr.msk.f32.mxu0 %vm1913_vm11, %v2082_v39  ;;  %v2085_v41 = vmul.f32 %v3964_v32, %v4630_v0 }
 0xd84   :  { %3769 = vmatprep.subr.mxu0 %v2410_v52  ;;  %3785 = vmatprep.mubr.msk.f32.mxu1 %vm1913_vm11, %v2527_v43 }
 0xd85   :  { %3770 = vmatpush3.msra.mxu0 %v2410_v52  ;;  %v2533_v49 = vpop.permute.xlu1 %2532 }
 0xd86   :  { %3772 = vmatmul.mubr.msk.f32.vlgmr.msra.gmra.mxu0 %vm1913_vm11, %v2083_v18 }
 0xd87   :  { %3774 = vmatprep.mubr.msk.f32.mxu0 %vm1913_vm11, %v2084_v25 }
 0xd8a   :  { %3775 = vmatmul.mubr.msk.f32.gmra.mxu0 %vm1913_vm11, %v2085_v41 }
 0xe2e   :  { %v3731_v53 = vpop.f32.mrf.mxu0 }
 0xe30   :  { %v2184_v58 = vpop.f32.mrf.mxu0 }
 0xe32   :  { %v3734_v15 = vpop.f32.mrf.mxu0 }
 0xe34   :  { %v2194_v36 = vpop.f32.mrf.mxu0 }
 0xe36   :  { %v3745_v11 = vpop.f32.mrf.mxu0 }
 0xe37   :  { %v2287_v3 = vadd.f32 %v3745_v11, %v3731_v53 }
 0xe38   :  { %v2281_v9 = vpop.f32.mrf.mxu0 }
 0xe39   :  { %v2282_v50 = vadd.f32 %v2281_v9, %v2184_v58 }
 0xe3a   :  { %v3748_v7 = vpop.f32.mrf.mxu0 }
 0xe3b   :  { %v2297_v12 = vadd.f32 %v3748_v7, %v3734_v15 }
 0xe3c   :  { %v2291_v57 = vpop.f32.mrf.mxu0 }
 0xe3d   :  { %v2292_v14 = vadd.f32 %v2291_v57, %v2194_v36 }
 0xe3e   :  { %v3759_v28 = vpop.f32.mrf.mxu0 }
 0xe40   :  { %v2390_v5 = vpop.f32.mrf.mxu0 }
 0xe42   :  { %v3762_v22 = vpop.f32.mrf.mxu0 }
 0xe44   :  { %v2400_v54 = vpop.f32.mrf.mxu0 }
 0xe46   :  { %v3773_v37 = vpop.f32.mrf.mxu0 }
 0xe47   :  { %v2505_v55 = vadd.f32 %v3773_v37, %v3759_v28 }
 0xe48   :  { %v2499_v24 = vpop.f32.mrf.mxu0 }
 0xe49   :  { %v2500_v30 = vadd.f32 %v2499_v24, %v2390_v5  ;;  %v2519_v19 = vadd.f32 %v2505_v55, %v2287_v3  ;;  %v2618_v24 = vld [vmem:[#allocation2 + $0x80] sm:$0xf] }
 0xe4a   :  { %v3776_v0 = vpop.f32.mrf.mxu0 }
 0xe4b   :  { %v2515_v10 = vadd.f32 %v3776_v0, %v3762_v22  ;;  %v2518_v21 = vadd.f32 %v2500_v30, %v2282_v50 }
 0xe4c   :  { %v2509_v35 = vpop.f32.mrf.mxu0 }
 0xe4d   :  { %v2521_v26 = vadd.f32 %v2515_v10, %v2297_v12  ;;  %v2510_v59 = vadd.f32 %v2509_v35, %v2400_v54 }
 0xe4f   :  { %v2520_v13 = vadd.f32 %v2510_v59, %v2292_v14  ;;  %3777 = vmatprep.subr.mxu1 %v2521_v26 }
 0xe50   :  { %3778 = vmatpush3.msra.mxu1 %v2521_v26 }
 0xe51   :  { %3779 = vmatprep.subr.mxu1 %v2520_v13 }
 0xe52   :  { %3780 = vmatpush3.msra.mxu1 %v2520_v13 }
 0xe53   :  { %3781 = vmatprep.subr.mxu1 %v2519_v19 }
 0xe54   :  { %3782 = vmatpush3.msra.mxu1 %v2519_v19 }
 0xe55   :  { %3783 = vmatprep.subr.mxu1 %v2518_v21 }
 0xe56   :  { %3784 = vmatpush3.msra.mxu1 %v2518_v21 }
 0xe57   :  { %3786 = vmatmul.mubr.msk.f32.vlgmr.msra.gmra.mxu1 %vm1913_vm11, %v2529_v45  ;;  %3807 = vmatprep.subr.mxu1 %v3979_v48 }
 0xe58   :  { %3808 = vmatpush3.msra.mxu1 %v3979_v48 }
 0xf17   :  { %v3787_v33 = vpop.f32.mrf.mxu1 }
 0xf18   :  { %v2612_v34 = vadd.f32 %v3787_v33, %v2533_v49 }
 0xf19   :  { %v2606_v46 = vpop.f32.mrf.mxu1 }
 0xf1a   :  { %v2616_v20 = vadd.f32 %v2612_v34, %v4240_v63  ;;  %v2607_v60 = vadd.f32 %v2606_v46, %v2531_v44  ;;  %v3980_v44 = vld [vmem:[#allocation2 + $0x100] ss:$0 sm:$0xff]  ;;  %v4031_v34 = vmov 112  }
 0xf1c   :  { %v2615_v17 = vadd.f32 %v2607_v60, %v4242_v8  ;;  %2622 = vrot.lane.b32.xlu1 %v2616_v20, %s4012_s1 }
 0xf1e   :  { %2619 = vrot.lane.b32.xlu0 %v2615_v17, %s4012_s1 }
 0xf8e   :  { %v2623_v40 = vpop.permute.xlu1 %2622 }
 0xf8f   :  { %v2624_v4 = vsel %vm551_vm5, %v2623_v40, %v2616_v20 }
 0xf90   :  { %v2620_v23 = vpop.permute.xlu0 %2619  ;;  %2627 = vrot.lane.b32.xlu1 %v2624_v4, %s4012_s1 }
 0xf91   :  { %v2621_v29 = vsel %vm551_vm5, %v2620_v23, %v2615_v17 }
 0xf92   :  { %2625 = vrot.lane.b32.xlu0 %v2621_v29, %s4012_s1 }
0x1002   :  { %v2628_v31 = vpop.permute.xlu1 %2627 }
0x1003   :  { %v2630_v63 = vsel %vm551_vm5, %v2628_v31, %v2616_v20 }
0x1004   :  { %v2638_v47 = vmul.f32 %v2630_v63, %v4185_v61  ;;  %v2626_v8 = vpop.permute.xlu0 %2625  ;;  %v2636_v39 = vmul.f32 %v2630_v63, %v4191_v2  ;;  %v2634_v53 = vmul.f32 %v2630_v63, %v4194_v6  ;;  %v2632_v28 = vmul.f32 %v2630_v63, %v4205_v27 }
0x1005   :  { %v2629_v51 = vsel %vm551_vm5, %v2626_v8, %v2615_v17 }
0x1006   :  { %2670 = vrot.lane.b32.xlu1 %v2638_v47, %s4020_s28  ;;  %v2635_v52 = vmul.f32 %v2629_v51, %v4191_v2  ;;  %v2637_v18 = vmul.f32 %v2629_v51, %v4185_v61  ;;  %v2659_v32 = vrot.slane %v2636_v39, 4  ;;  %v2633_v41 = vmul.f32 %v2629_v51, %v4194_v6 }
0x1007   :  { %v2642_v2 = vrot.slane %v2634_v53, 4  ;;  %v2631_v37 = vmul.f32 %v2629_v51, %v4205_v27 }
0x1008   :  { %v2658_v25 = vrot.slane %v2635_v52, 4  ;;  %2668 = vrot.lane.b32.xlu0 %v2637_v18, %s4020_s28  ;;  %v2641_v58 = vrot.slane %v2633_v41, 4 }
0x100a   :  { %v2660_v43 = vsel %vm804_vm10, %v2658_v25, %v2659_v32  ;;  %v2643_v61 = vsel %vm804_vm10, %v2641_v58, %v2642_v2 }
0x100b   :  { %2663 = vrot.lane.b32.xlu1 %v2660_v43, %s4021_s29 }
0x100c   :  { %2653 = vrot.lane.b32.xlu0 %v2616_v20, %s4022_s30 }
0x100f   :  { %2661 = vrot.lane.b32.xlu1 %v2658_v25, %s4021_s29 }
0x1010   :  { %2651 = vrot.lane.b32.xlu0 %v2615_v17, %s4022_s30 }
0x1013   :  { %2646 = vrot.lane.b32.xlu1 %v2643_v61, %s4024_s5 }
0x1014   :  { %2644 = vrot.lane.b32.xlu0 %v2641_v58, %s4024_s5 }
0x1078   :  { %v2671_v15 = vpop.permute.xlu1 %2670 }
0x1079   :  { %2705 = vrot.lane.b32.xlu1 %v2671_v15, %s4025_s6 }
0x107a   :  { %v2669_v36 = vpop.permute.xlu0 %2668 }
0x107b   :  { %2703 = vrot.lane.b32.xlu0 %v2669_v36, %s4025_s6 }
0x107d   :  { %v2664_v6 = vpop.permute.xlu1 %2663 }
0x107e   :  { %v2654_v11 = vpop.permute.xlu0 %2653  ;;  %2701 = vrot.lane.b32.xlu1 %v2664_v6, %s4025_s6 }
0x1081   :  { %v2662_v9 = vpop.permute.xlu1 %2661 }
0x1082   :  { %v2673_v7 = vsel %vm804_vm10, %v2654_v11, %v2662_v9  ;;  %v2652_v57 = vpop.permute.xlu0 %2651 }
0x1083   :  { %2699 = vrot.lane.b32.xlu0 %v2673_v7, %s4025_s6  ;;  %2697 = vrot.lane.b32.xlu1 %v2652_v57, %s4025_s6 }
0x1085   :  { %v2647_v5 = vpop.permute.xlu1 %2646 }
0x1086   :  { %v2645_v22 = vpop.permute.xlu0 %2644 }
0x1087   :  { %v2672_v54 = vsel %vm804_vm10, %v2632_v28, %v2645_v22  ;;  %2695 = vrot.lane.b32.xlu0 %v2647_v5, %s4025_s6 }
0x1088   :  { %2693 = vrot.lane.b32.xlu1 %v2672_v54, %s4025_s6 }
0x108b   :  { %2691 = vrot.lane.b32.xlu0 %v2631_v37, %s4025_s6 }
0x108c   :  { %2684 = vrot.lane.b32.xlu1 %v4513_v16, %s4013_s21 }
0x108f   :  { %2686 = vrot.lane.b32.xlu0 %v2618_v24, %s4013_s21 }
0x1090   :  { %2679 = vperm.xlu1 %3868, %v4658_v56  }
0x1093   :  { %2675 = vperm.xlu0 %3869, %v4663_v38  }
0x1094   :  { %2850 = vrot.lane.b32.xlu1 %v4663_v38, %s4015_s22 }
0x1095   :  { %3870 = vset.pattern.permute.xlu1 %v4031_v34 }
0x1097   :  { %3872 = vset.pattern.permute.xlu0 %v4028_v62 }
0x1098   :  { %2852 = vrot.lane.b32.xlu1 %v4658_v56, %s4015_s22 }
0x10eb   :  { %v2706_v27 = vpop.permute.xlu1 %2705 }
0x10ec   :  { %3788 = vmatprep.subr.msk.mxu0 %vm804_vm10, %v2706_v27 }
0x10ed   :  { %3789 = vmatpush3.msk.msra.mxu0 %vm804_vm10, %v2706_v27  ;;  %v2704_v16 = vpop.permute.xlu0 %2703 }
0x10ee   :  { %3790 = vmatprep.subr.mxu0 %v2704_v16 }
0x10ef   :  { %3791 = vmatpush3.msra.mxu0 %v2704_v16 }
0x10f0   :  { %v2702_v0 = vpop.permute.xlu1 %2701 }
0x10f1   :  { %3792 = vmatprep.subr.mxu0 %v2702_v0 }
0x10f2   :  { %3793 = vmatpush3.msra.mxu0 %v2702_v0 }
0x10f5   :  { %v2700_v12 = vpop.permute.xlu0 %2699  ;;  %v2698_v10 = vpop.permute.xlu1 %2697 }
0x10f6   :  { %3794 = vmatprep.subr.mxu0 %v2700_v12 }
0x10f7   :  { %3795 = vmatpush3.msra.mxu0 %v2700_v12 }
0x10f8   :  { %3796 = vmatprep.subr.mxu0 %v2698_v10 }
0x10f9   :  { %v2696_v35 = vpop.permute.xlu0 %2695  ;;  %3797 = vmatpush3.msra.mxu0 %v2698_v10 }
0x10fa   :  { %3798 = vmatprep.subr.mxu0 %v2696_v35  ;;  %v2694_v14 = vpop.permute.xlu1 %2693 }
0x10fb   :  { %3799 = vmatpush3.msra.mxu0 %v2696_v35 }
0x10fc   :  { %3800 = vmatprep.subr.mxu0 %v2694_v14 }
0x10fd   :  { %v2692_v55 = vpop.permute.xlu0 %2691  ;;  %3801 = vmatpush3.msra.mxu0 %v2694_v14 }
0x10fe   :  { %3802 = vmatprep.subr.mxu0 %v2692_v55  ;;  %v2685_v26 = vpop.permute.xlu1 %2684 }
0x10ff   :  { %3803 = vmatpush3.msra.mxu0 %v2692_v55  ;;  %3804 = vmatprep.mubr.msk.f32.mxu0 %vm2714_vm12, %v2685_v26 }
0x1101   :  { %v2687_v59 = vpop.permute.xlu0 %2686 }
0x1102   :  { %3805 = vmatmul.mubr.msk.f32.vlgmr.msra.gmra.mxu0 %vm2714_vm12, %v2687_v59 }
0x110b   :  { %v2680_v3 = vpop.permute.xlu1 %2679 }
0x110e   :  { %v2676_v19 = vpop.permute.xlu0 %2675 }
0x110f   :  { %v2851_v30 = vpop.permute.xlu1 %2850 }
0x1110   :  { %3809 = vmatprep.mubr.msk.f32.mxu1 %vm467_vm4, %v2851_v30 }
0x1113   :  { %v2853_v13 = vpop.permute.xlu1 %2852 }
0x1114   :  { %3810 = vmatmul.mubr.msk.f32.vlgmr.msra.gmra.mxu1 %vm467_vm4, %v2853_v13  ;;  %v2947_v13 = vld [vmem:[#allocation2 + $0xf0] sm:$0x7] }
0x11c2   :  { %v3806_v50 = vpop.f32.mrf.mxu0 }
0x11c3   :  { %v2793_v21 = vadd.f32 %v3806_v50, %v2680_v3  ;;  %v2972_v3 = vsub.s32 2, %v4174_v42 }
0x11c4   :  { %v2787_v45 = vpop.f32.mrf.mxu0 }
0x11c5   :  { %v2788_v48 = vadd.f32 %v2787_v45, %v2676_v19  ;;  %v2799_v49 = vsel %vm725_vm7, %v2793_v21, 0.0  ;;  %v2973_v19 = vrot.slane %v2947_v13, %v2972_v3 }
0x11c6   :  { %2800 = vadd.xlane.f32.xlu0 %v2799_v49 }
0x11c7   :  { %v2796_v33 = vsel %vm721_vm8, %v2788_v48, 0.0 }
0x11c8   :  { %2797 = vadd.xlane.f32.xlu1 %v2796_v33 }
0x11d4   :  { %v3811_v0 = vpop.f32.mrf.mxu1 }
0x11d6   :  { %v2924_v26 = vpop.f32.mrf.mxu1 }
0x11d9   :  { %2822 = vrot.lane.b32.xlu1 %v3980_v44, %s4013_s21 }
0x11dd   :  { %2940 = vperm.xlu1 %3870, %v4658_v56  }
0x11e1   :  { %2936 = vperm.xlu1 %3870, %v4663_v38  }
0x11e5   :  { %3871 = vset.pattern.permute.xlu1 %v4028_v62 }
0x124f   :  { %v2801_v46 = vpop.xlane.xlu0 %2800 }
0x1250   :  { %v2803_v20 = vmul.f32 0.0625, %v2801_v46 }
0x1251   :  { %v2798_v60 = vpop.xlane.xlu1 %2797 }
0x1252   :  { %v2805_v17 = vsub.f32 %v2793_v21, %v2803_v20  ;;  %v2802_v40 = vmul.f32 0.0625, %v2798_v60  ;;  %v2963_v60 = vrot.slane %v2947_v13, %v560_v1 }
0x1254   :  { %v2804_v4 = vsub.f32 %v2788_v48, %v2802_v40  ;;  %v2807_v23 = vmul.f32 %v2805_v17, %v2805_v17 }
0x1255   :  { %v2823_v52 = vpop.permute.xlu1 %2822 }
0x1256   :  { %v2811_v29 = vsel %vm725_vm7, %v2807_v23, 0.0  ;;  %v2806_v31 = vmul.f32 %v2804_v4, %v2804_v4 }
0x1257   :  { %2812 = vadd.xlane.f32.xlu0 %v2811_v29 }
0x1258   :  { %v2808_v63 = vsel %vm721_vm8, %v2806_v31, 0.0 }
0x1259   :  { %v2941_v12 = vpop.permute.xlu1 %2940 }
0x125b   :  { %2809 = vadd.xlane.f32.xlu0 %v2808_v63 }
0x125d   :  { %v2937_v30 = vpop.permute.xlu1 %2936 }
0x1271   :  { %2827 = vrot.lane.b32.xlu0 %v3980_v44, %s4029_s8 }
0x12e0   :  { %v2813_v56 = vpop.xlane.xlu0 %2812 }
0x12e1   :  { %v2815_v38 = vmul.f32 0.0625, %v2813_v56 }
0x12e3   :  { %v2817_v47 = vadd.f32 1e-05, %v2815_v38 }
0x12e4   :  { %v2810_v62 = vpop.xlane.xlu0 %2809 }
0x12e5   :  { %3965 = vrsqrt.f32 %v2817_v47  ;;  %v2814_v8 = vmul.f32 0.0625, %v2810_v62 }
0x12e7   :  { %v2816_v39 = vadd.f32 1e-05, %v2814_v8  ;;  %v3981_v8 = vld [vmem:[#allocation2 + $0x88] sm:$0xff] }
0x12e8   :  { %v2828_v32 = vpop.permute.xlu0 %2827 }
0x12e9   :  { %3967 = vrsqrt.f32 %v2816_v39  ;;  %v2946_v39 = vld [vmem:[#allocation2 + $0x90] sm:$0xf] }
0x12f2   :  { %v3966_v51 = vpop.eup %3965 }
0x12f3   :  { %v2821_v18 = vmul.f32 %v3966_v51, %v2805_v17  ;;  %v3982_v51 = vld [vmem:[#allocation2 + $0xd0] sm:$0xff] }
0x12f5   :  { %v2826_v25 = vmul.f32 %v2823_v52, %v2821_v18 }
0x12f6   :  { %v3968_v41 = vpop.eup %3967 }
0x12f7   :  { %v2820_v43 = vmul.f32 %v3968_v41, %v2804_v4  ;;  %v2831_v53 = vadd.f32 %v2828_v32, %v2826_v25 }
0x12f9   :  { %v2825_v58 = vmul.f32 %v2823_v52, %v2820_v43  ;;  %v2833_v2 = vmin.f32 %v2831_v53, 20.0  ;;  %v3983_v52 = vld [vmem:[#allocation2 + $0xc8] sm:$0xff] }
0x12fb   :  { %v2830_v61 = vadd.f32 %v2828_v32, %v2825_v58  ;;  %v2836_v15 = vmul.f32 1.442695, %v2833_v2 }
0x12fd   :  { %v2832_v36 = vmin.f32 %v2830_v61, 20.0  ;;  %3969 = vpow2.f32 %v2836_v15  ;;  %v3101_v15 = vld [vmem:[#allocation2 + $0xe8] sm:$0xff] }
0x12ff   :  { %v2834_v6 = vmul.f32 1.442695, %v2832_v36  ;;  %v3102_v36 = vld [vmem:[#allocation2 + $0xf0] sm:$0xf] }
0x1301   :  { %3971 = vpow2.f32 %v2834_v6 }
0x130a   :  { %v3970_v11 = vpop.eup %3969 }
0x130b   :  { %v2839_v9 = vadd.f32 2.0, %v3970_v11 }
0x130d   :  { %v2841_v7 = vmul.f32 %v3970_v11, %v2839_v9 }
0x130e   :  { %v3972_v57 = vpop.eup %3971 }
0x130f   :  { %v2843_v28 = vadd.f32 2.0, %v2841_v7  ;;  %v2838_v5 = vadd.f32 2.0, %v3972_v57 }
0x1311   :  { %3973 = vrcp.f32 %v2843_v28  ;;  %v2840_v22 = vmul.f32 %v3972_v57, %v2838_v5 }
0x1313   :  { %v2842_v54 = vadd.f32 2.0, %v2840_v22 }
0x1315   :  { %3975 = vrcp.f32 %v2842_v54 }
0x131e   :  { %v3974_v37 = vpop.eup %3973 }
0x131f   :  { %v2847_v24 = vmul.f32 %v3974_v37, %v2841_v7 }
0x1321   :  { %v2849_v27 = vmul.f32 %v2847_v24, %v2831_v53 }
0x1322   :  { %v3976_v16 = vpop.eup %3975 }
0x1323   :  { %v2934_v10 = vadd.f32 %v3811_v0, %v2849_v27  ;;  %v2846_v35 = vmul.f32 %v3976_v16, %v2840_v22 }
0x1325   :  { %v2848_v14 = vmul.f32 %v2846_v35, %v2830_v61  ;;  %v2944_v55 = vadd.f32 %v2941_v12, %v2934_v10 }
0x1327   :  { %v2933_v59 = vadd.f32 %v2924_v26, %v2848_v14  ;;  %3201 = vst.msk [vmem:[%s4838_s3 + $0x8] sm:$0xf] %vm725_vm7, %v2944_v55  ;;  %2951 = vrot.lane.b32.xlu0 %v2944_v55, %s4012_s1  ;;  %v2983_v23 = vrot.slane %v2944_v55, 4 }
0x1329   :  { %v2943_v50 = vadd.f32 %v2937_v30, %v2933_v59 }
0x132b   :  { %3200 = vst.msk [vmem:[%s4838_s3] sm:$0xff] %vm721_vm8, %v2943_v50  ;;  %2948 = vrot.lane.b32.xlu1 %v2943_v50, %s4012_s1  ;;  %v2982_v4 = vrot.slane %v2943_v50, 4 }
0x132d   :  { %v2984_v29 = vsel %vm804_vm10, %v2982_v4, %v2983_v23 }
0x132f   :  { %2975 = vrot.lane.b32.xlu1 %v2973_v19, %s4032_s15 }
0x1399   :  { %v2952_v21 = vpop.permute.xlu0 %2951 }
0x139a   :  { %v2953_v45 = vsel %vm551_vm5, %v2952_v21, %v2944_v55 }
0x139b   :  { %2956 = vrot.lane.b32.xlu0 %v2953_v45, %s4012_s1 }
0x139d   :  { %v2949_v48 = vpop.permute.xlu1 %2948 }
0x139e   :  { %v2950_v49 = vsel %vm551_vm5, %v2949_v48, %v2943_v50 }
0x139f   :  { %2954 = vrot.lane.b32.xlu0 %v2950_v49, %s4012_s1 }
0x13a1   :  { %v2976_v33 = vpop.permute.xlu1 %2975 }
0x140d   :  { %v2957_v44 = vpop.permute.xlu0 %2956 }
0x140e   :  { %v2959_v34 = vsel %vm551_vm5, %v2957_v44, %v2944_v55 }
0x140f   :  { %v2979_v46 = vmul.f32 %v2976_v33, %v2959_v34 }
0x1411   :  { %v2955_v20 = vpop.permute.xlu0 %2954  ;;  %2994 = vrot.lane.b32.xlu1 %v2979_v46, %s4022_s30 }
0x1412   :  { %v2958_v17 = vsel %vm551_vm5, %v2955_v20, %v2943_v50 }
0x1413   :  { %v2978_v40 = vmul.f32 %v2976_v33, %v2958_v17 }
0x1415   :  { %2965 = vrot.lane.b32.xlu1 %v2963_v60, %s4033_s16  ;;  %2992 = vrot.lane.b32.xlu0 %v2978_v40, %s4022_s30 }
0x1419   :  { %2985 = vrot.lane.b32.xlu1 %v2982_v4, %s4034_s17  ;;  %2987 = vrot.lane.b32.xlu0 %v2984_v29, %s4034_s17 }
0x1483   :  { %v2995_v31 = vpop.permute.xlu1 %2994 }
0x1484   :  { %3013 = vrot.lane.b32.xlu0 %v2995_v31, %s4035_s18 }
0x1487   :  { %v2966_v63 = vpop.permute.xlu1 %2965  ;;  %v2993_v42 = vpop.permute.xlu0 %2992 }
0x1488   :  { %3011 = vrot.lane.b32.xlu1 %v2993_v42, %s4035_s18  ;;  %v2969_v1 = vmul.f32 %v2966_v63, %v2959_v34  ;;  %v2968_v62 = vmul.f32 %v2966_v63, %v2958_v17 }
0x148b   :  { %v2986_v56 = vpop.permute.xlu1 %2985  ;;  %v2988_v38 = vpop.permute.xlu0 %2987 }
0x148c   :  { %v2996_v47 = vsel %vm804_vm10, %v2969_v1, %v2986_v56  ;;  %3009 = vrot.lane.b32.xlu0 %v2988_v38, %s4035_s18 }
0x148d   :  { %3007 = vrot.lane.b32.xlu1 %v2996_v47, %s4035_s18 }
0x1490   :  { %3005 = vrot.lane.b32.xlu0 %v2968_v62, %s4035_s18 }
0x1491   :  { %2999 = vrot.lane.b32.xlu1 %v3981_v8, %s4013_s21 }
0x1494   :  { %3001 = vrot.lane.b32.xlu0 %v2946_v39, %s4013_s21 }
0x1495   :  { %3115 = vrot.lane.b32.xlu1 %v3982_v51, %s4029_s8 }
0x1498   :  { %3113 = vrot.lane.b32.xlu0 %v3983_v52, %s4029_s8 }
0x1499   :  { %3105 = vperm.xlu1 %3871, %v3101_v15  }
0x149c   :  { %3110 = vperm.xlu0 %3872, %v3102_v36  }
0x14f6   :  { %v3014_v18 = vpop.permute.xlu0 %3013 }
0x14f7   :  { %3812 = vmatprep.subr.msk.mxu1 %vm804_vm10, %v3014_v18 }
0x14f8   :  { %3813 = vmatpush3.msk.msra.mxu1 %vm804_vm10, %v3014_v18 }
0x14fa   :  { %v3012_v32 = vpop.permute.xlu1 %3011 }
0x14fb   :  { %3814 = vmatprep.subr.mxu1 %v3012_v32 }
0x14fc   :  { %3815 = vmatpush3.msra.mxu1 %v3012_v32 }
0x14fe   :  { %v3010_v25 = vpop.permute.xlu0 %3009 }
0x14ff   :  { %v3008_v41 = vpop.permute.xlu1 %3007  ;;  %3816 = vmatprep.subr.mxu1 %v3010_v25 }
0x1500   :  { %3817 = vmatpush3.msra.mxu1 %v3010_v25 }
0x1501   :  { %3818 = vmatprep.subr.mxu1 %v3008_v41 }
0x1502   :  { %3819 = vmatpush3.msra.mxu1 %v3008_v41  ;;  %v3006_v43 = vpop.permute.xlu0 %3005 }
0x1503   :  { %3820 = vmatprep.subr.mxu1 %v3006_v43  ;;  %v3000_v53 = vpop.permute.xlu1 %2999 }
0x1504   :  { %3821 = vmatpush3.msra.mxu1 %v3006_v43  ;;  %3822 = vmatprep.mubr.msk.f32.mxu1 %vm3019_vm13, %v3000_v53 }
0x1506   :  { %v3002_v58 = vpop.permute.xlu0 %3001 }
0x1507   :  { %3823 = vmatmul.mubr.msk.f32.vlgmr.msra.gmra.mxu1 %vm3019_vm13, %v3002_v58  ;;  %v3116_v2 = vpop.permute.xlu1 %3115 }
0x1508   :  { %3825 = vmatprep.subr.mxu0 %v3116_v2 }
0x1509   :  { %3826 = vmatpush3.msra.mxu0 %v3116_v2 }
0x150a   :  { %v3114_v61 = vpop.permute.xlu0 %3113 }
0x150b   :  { %3827 = vmatprep.subr.mxu0 %v3114_v61 }
0x150c   :  { %3828 = vmatpush3.msra.mxu0 %v3114_v61 }
0x1514   :  { %v3106_v7 = vpop.permute.xlu1 %3105 }
0x1517   :  { %v3111_v5 = vpop.permute.xlu0 %3110 }
0x15c7   :  { %v3824_v6 = vpop.f32.mrf.mxu1 }
0x15c9   :  { %v3092_v11 = vpop.f32.mrf.mxu1 }
0x15ca   :  { %3829 = vmatprep.mubr.msk.f32.mxu0 %vm721_vm8, %v3092_v11 }
0x15cb   :  { %3830 = vmatmul.mubr.msk.f32.vlgmr.msra.gmra.mxu0 %vm721_vm8, %v3824_v6 }
0x168b   :  { %v3831_v9 = vpop.f32.mrf.mxu0 }
0x168c   :  { %v3197_v22 = vadd.f32 %v3831_v9, %v3111_v5 }
0x168d   :  { %v3191_v57 = vpop.f32.mrf.mxu0 }
0x168e   :  { %v3192_v28 = vadd.f32 %v3191_v57, %v3106_v7 }
0x1690   :  { %3204 = vrot.lane.b32.xlu1 %v3192_v28, %s4012_s1 }
0x1694   :  { %3206 = vrot.lane.b32.xlu1 %v3197_v22, %s4012_s1 }
0x1702   :  { %v3205_v54 = vpop.permute.xlu1 %3204 }
0x1703   :  { %3211 = vst.msk [vmem:[%s4838_s3] sm:$0xff] %vm3210_vm14, %v3205_v54 }
0x1706   :  { %v3207_v37 = vpop.permute.xlu1 %3206 }
0x1707   :  { %3213 = vst.msk [vmem:[%s4838_s3 + $0x8] sm:$0xf] %vm3212_vm15, %v3207_v37 }
0x1708   :  { %3218 = vsyncpa [#allocation3], 1 }

</bundles_post_ra>
